<compile_context>
chip_gen: v5e
topology: v5e:2x2
jax: 0.10.0
libtpu: 0.0.40
codegen_flags: <defaults>
</compile_context>

<pallas_src>
import functools

import jax
import jax.numpy as jnp
from jax.experimental import pallas as pl
from jax.experimental.pallas import tpu as pltpu


def _round_up(x, m):
    return -(-x // m) * m


# -----------------------------------------------------------------------------
# Kernel
# -----------------------------------------------------------------------------
def _bidfsmn_kernel(x_ref, halo_ref, wmem_ref, pmem_ref, w1_ref, p1_ref,
                    w2_ref, p2_ref, out_ref, xp_ref, *, left, right, dilation):
    """One (batch, time-tile) grid step, NCW layout (channels=sublanes, time=lanes).

    x_ref    : (Mp, tT)         input tile (unpadded in time)
    halo_ref : (Mp, ld+rd)      left/right halo columns for this tile
    wmem_ref : (Mp, K)    f32   depthwise taps, BN scale folded in
    pmem_ref : (Mp, 2)    f32   [folded bias, prelu alpha]
    w1_ref   : (Hp, Mp)   bf16  1x1 conv M->H weight, BN scale folded in
    p1_ref   : (Hp, 2)    f32
    w2_ref   : (Mp, Hp)   bf16  1x1 conv H->M weight, BN scale folded in
    p2_ref   : (Mp, 2)    f32
    out_ref  : (Mp, tT)
    xp_ref   : (Mp, tT+ld+rd) f32 VMEM scratch (haloed tile, then mem_out stash)
    """
    _, tT = out_ref.shape
    d = dilation
    K = left + right + 1
    ld = left * d
    rd = right * d

    x = x_ref[...].astype(jnp.float32)                       # (Mp, tT)

    # Assemble the haloed tile: only the columns that are read are written
    # (no full zero-fill of the scratch, no padded HBM copy in the wrapper).
    if ld > 0:
        xp_ref[:, 0:ld] = halo_ref[:, 0:ld].astype(jnp.float32)
    xp_ref[:, ld:ld + tT] = x
    if rd > 0:
        xp_ref[:, ld + tT:ld + tT + rd] = halo_ref[:, ld:ld + rd].astype(jnp.float32)

    # ---- memory branch: depthwise conv = K shifted VMEM reads (VPU, f32) ----
    mem = xp_ref[:, 0:tT] * wmem_ref[:, 0:1]
    for k in range(1, K):                       # K static & small -> unrolled
        mem = mem + xp_ref[:, k * d:k * d + tT] * wmem_ref[:, k:k + 1]
    mem = mem + pmem_ref[:, 0:1]                # conv bias + BN bias (pre-folded)
    mem = jnp.where(mem >= 0, mem, pmem_ref[:, 1:2] * mem)   # PReLU
    mem_out = mem + x                           # residual

    # Stash mem_out in VMEM (reuse the scratch interior) so it is not live in
    # vregs across both MXU matmuls; reloaded for the final residual add.
    xp_ref[:, 0:tT] = mem_out

    # ---- fc_trans branch: two 1x1 convs as MXU matmuls (bf16 x bf16 -> f32) --
    h = jnp.dot(w1_ref[...], mem_out.astype(w1_ref.dtype),
                preferred_element_type=jnp.float32)           # (Hp, tT)
    h = h + p1_ref[:, 0:1]
    h = jnp.where(h >= 0, h, p1_ref[:, 1:2] * h)

    f = jnp.dot(w2_ref[...], h.astype(w2_ref.dtype),
                preferred_element_type=jnp.float32)           # (Mp, tT)
    f = f + p2_ref[:, 0:1]
    f = jnp.where(f >= 0, f, p2_ref[:, 1:2] * f)

    out_ref[...] = (f + xp_ref[:, 0:tT]).astype(out_ref.dtype)


# -----------------------------------------------------------------------------
# Tile sizing (cross-generation VMEM budget; see review notes)
# -----------------------------------------------------------------------------
def _tile_vmem_bytes(Mp, Hp, K, halo, tT, in_bytes, out_bytes, w_bytes):
    """Rough per-step VMEM footprint: double-buffered I/O + weights + scratch
    + the large in-kernel temporaries, with (8,128) tile padding accounted."""
    def tile2d(rows, cols, itemsize):
        return _round_up(rows, 8) * _round_up(cols, 128) * itemsize

    x_in = 2 * tile2d(Mp, tT, in_bytes)
    x_out = 2 * tile2d(Mp, tT, out_bytes)
    h_in = 2 * tile2d(Mp, max(halo, 1), in_bytes)
    scr = tile2d(Mp, tT + halo, 4)
    wts = 2 * (tile2d(Mp, K, 4) + 2 * tile2d(Mp, 2, 4) + tile2d(Hp, 2, 4)
               + tile2d(Hp, Mp, w_bytes) + tile2d(Mp, Hp, w_bytes))
    temps = tile2d(Hp, tT, 4) + tile2d(Mp, tT, 4)     # h and f / mem values
    return x_in + x_out + h_in + scr + wts + temps


def _choose_time_tile(Mp, Hp, K, halo, T, in_bytes, out_bytes, w_bytes,
                      budget_bytes, max_tile=2048):
    cap = min(max_tile, _round_up(T, 128))
    tT = 128
    for cand in range(128, cap + 1, 128):
        need = _tile_vmem_bytes(Mp, Hp, K, halo, cand, in_bytes, out_bytes, w_bytes)
        if need * 13 // 10 <= budget_bytes:           # 30% safety margin
            tT = cand
        else:
            break
    if cap >= 256:
        tT = max(tT, 256)                             # keep MXU lane dim >= 256
    return tT


# -----------------------------------------------------------------------------
# Wrapper
# -----------------------------------------------------------------------------
def bidfsmn_forward(x, params, *, left, right, dilation,
                    time_tile=None, vmem_budget_bytes=40 << 20):
    """x: (B, M, T) NCW.  `params` from fold_params().  Returns (B, M, T)."""
    B, M, T = x.shape
    Mp, K = params["wmem"].shape
    Hp = params["w1"].shape[0]
    assert K == left + right + 1
    assert Mp >= M
    d = dilation
    ld, rd = left * d, right * d
    halo = ld + rd
    assert halo > 0, "kernel expects left_kernel_size + right_kernel_size >= 1"

    in_bytes = jnp.dtype(x.dtype).itemsize
    w_bytes = jnp.dtype(params["w1"].dtype).itemsize
    out_dtype = x.dtype

    if time_tile is None:
        tT = _choose_time_tile(Mp, Hp, K, halo, T, in_bytes, in_bytes, w_bytes,
                               vmem_budget_bytes)
    else:
        tT = int(time_tile)
    assert tT % 128 == 0, "time tile must be a multiple of 128 lanes"
    T_pad = _round_up(max(T, tT), tT)
    nT = T_pad // tT

    # Channel-pad to the MXU-friendly Mp and time-pad to whole lane-dense tiles
    # (both sliced off at the end; padded channels have zero weights/biases).
    xp = jnp.pad(x, ((0, 0), (0, Mp - M), (0, T_pad - T)))
    # Per-tile halo columns as a tiny side input (keeps the main input blocks
    # disjoint so BlockSpec auto-pipelining works; no overlapping fetches).
    xh = jnp.pad(xp, ((0, 0), (0, 0), (ld, rd)))
    lefts = jnp.stack([xh[:, :, t * tT:t * tT + ld] for t in range(nT)], axis=1)
    rights = jnp.stack([xh[:, :, ld + (t + 1) * tT:ld + (t + 1) * tT + rd]
                        for t in range(nT)], axis=1)
    halo_arr = jnp.concatenate([lefts, rights], axis=-1)      # (B, nT, Mp, halo)

    kern = functools.partial(_bidfsmn_kernel, left=left, right=right, dilation=d)

    need = _tile_vmem_bytes(Mp, Hp, K, halo, tT, in_bytes, in_bytes, w_bytes)
    vmem_limit = int(min(max(need * 3 // 2, 16 << 20), 64 << 20))

    flops = int(B * T_pad * (4 * Mp * Hp + (2 * K + 8) * Mp))
    bytes_accessed = int(B * Mp * T_pad * 2 * in_bytes
                         + B * nT * Mp * halo * in_bytes
                         + 2 * Mp * Hp * w_bytes
                         + (Mp * K + 2 * (2 * Mp + Hp)) * 4)

    out_pad = pl.pallas_call(
        kern,
        grid=(B, nT),
        in_specs=[
            pl.BlockSpec((None, Mp, tT), lambda b, t: (b, 0, t)),            # x tile
            pl.BlockSpec((None, None, Mp, halo), lambda b, t: (b, t, 0, 0)),  # halo
            pl.BlockSpec((Mp, K), lambda b, t: (0, 0)),    # depthwise taps (folded)
            pl.BlockSpec((Mp, 2), lambda b, t: (0, 0)),    # memory bias / alpha
            pl.BlockSpec((Hp, Mp), lambda b, t: (0, 0)),   # 1x1 conv M->H (bf16)
            pl.BlockSpec((Hp, 2), lambda b, t: (0, 0)),
            pl.BlockSpec((Mp, Hp), lambda b, t: (0, 0)),   # 1x1 conv H->M (bf16)
            pl.BlockSpec((Mp, 2), lambda b, t: (0, 0)),
        ],
        out_specs=pl.BlockSpec((None, Mp, tT), lambda b, t: (b, 0, t)),
        out_shape=jax.ShapeDtypeStruct((B, Mp, T_pad), out_dtype),
        scratch_shapes=[pltpu.VMEM((Mp, tT + halo), jnp.float32)],
        compiler_params=pltpu.CompilerParams(
            dimension_semantics=("parallel", "parallel"),   # megacore on v7x
            vmem_limit_bytes=vmem_limit),
        cost_estimate=pl.CostEstimate(flops=flops, transcendentals=0,
                                      bytes_accessed=bytes_accessed),
    )(xp, halo_arr, params["wmem"], params["pmem"], params["w1"], params["p1"],
      params["w2"], params["p2"])

    return out_pad[:, :M, :T]


# -----------------------------------------------------------------------------
# Parameters: raw (PyTorch-like) -> folded (kernel)
# -----------------------------------------------------------------------------
def make_raw_params(key, M, H, K, alpha=0.25):
    """Random parameters mirroring the PyTorch module (eval-mode BN stats)."""
    ks = jax.random.split(key, 18)
    nrm = lambda k, s, sc=0.1: sc * jax.random.normal(k, s, jnp.float32)
    uni = lambda k, s: jax.random.uniform(k, s, jnp.float32, 0.5, 1.5)
    bn = lambda k0, k1, k2, k3, n: dict(gamma=uni(k0, (n,)), beta=nrm(k1, (n,)),
                                        mean=nrm(k2, (n,)), var=uni(k3, (n,)))
    return dict(
        mem_w=nrm(ks[0], (M, K), 0.3),   # depthwise Conv1d weight (M,1,K) squeezed
        mem_b=nrm(ks[1], (M,)),
        bn_m=bn(ks[2], ks[3], ks[4], ks[5], M),
        w1=nrm(ks[6], (H, M), 0.2),      # Conv1d(M,H,1) weight (H,M,1) squeezed
        b1=nrm(ks[7], (H,)),
        bn_1=bn(ks[8], ks[9], ks[10], ks[11], H),
        w2=nrm(ks[12], (M, H), 0.2),     # Conv1d(H,M,1) weight (M,H,1) squeezed
        b2=nrm(ks[13], (M,)),
        bn_2=bn(ks[14], ks[15], ks[16], ks[17], M),
        alpha=jnp.float32(alpha),        # nn.PReLU() default single shared param
    )


def _bn_fold(bn, eps):
    s = bn["gamma"] / jnp.sqrt(bn["var"] + eps)
    return s, bn["beta"] - bn["mean"] * s


def fold_params(raw, *, channel_align=128, mxu_dtype=jnp.bfloat16, eps=1e-5):
    """Fold conv bias + eval-mode BN into the weights; zero-pad channel dims
    (M, H) to `channel_align` so the MXU contractions use full native tiles."""
    M, K = raw["mem_w"].shape
    H = raw["w1"].shape[0]
    Mp = _round_up(M, channel_align)
    Hp = _round_up(H, channel_align)
    a = raw["alpha"]

    s_m, t_m = _bn_fold(raw["bn_m"], eps)
    wmem = jnp.zeros((Mp, K), jnp.float32).at[:M].set(raw["mem_w"] * s_m[:, None])
    pmem = (jnp.zeros((Mp, 2), jnp.float32)
            .at[:M, 0].set(raw["mem_b"] * s_m + t_m).at[:, 1].set(a))

    s_1, t_1 = _bn_fold(raw["bn_1"], eps)
    w1 = jnp.zeros((Hp, Mp), jnp.float32).at[:H, :M].set(raw["w1"] * s_1[:, None])
    p1 = (jnp.zeros((Hp, 2), jnp.float32)
          .at[:H, 0].set(raw["b1"] * s_1 + t_1).at[:, 1].set(a))

    s_2, t_2 = _bn_fold(raw["bn_2"], eps)
    w2 = jnp.zeros((Mp, Hp), jnp.float32).at[:M, :H].set(raw["w2"] * s_2[:, None])
    p2 = (jnp.zeros((Mp, 2), jnp.float32)
          .at[:M, 0].set(raw["b2"] * s_2 + t_2).at[:, 1].set(a))

    return dict(wmem=wmem, pmem=pmem, w1=w1.astype(mxu_dtype), p1=p1,
                w2=w2.astype(mxu_dtype), p2=p2)


# -----------------------------------------------------------------------------
# Pure-JAX references
# -----------------------------------------------------------------------------
def reference_forward(x, raw, *, left, right, dilation, eps=1e-5):
    """f32 reference following the PyTorch op sequence (eval mode), built from
    the UN-folded parameters -- validates the BN/bias folding end to end."""
    B, M, T = x.shape
    d = dilation
    K = left + right + 1
    ld, rd = left * d, right * d
    a = raw["alpha"]
    hi = jax.lax.Precision.HIGHEST

    def bn(z, p):
        s = p["gamma"] / jnp.sqrt(p["var"] + eps)
        return (z - p["mean"][None, :, None]) * s[None, :, None] + p["beta"][None, :, None]

    prelu = lambda z: jnp.where(z >= 0, z, a * z)

    xpad = jnp.pad(x, ((0, 0), (0, 0), (ld, rd)))
    mem = raw["mem_b"][None, :, None]
    for k in range(K):                   # depthwise (groups=M) Conv1d, dilation d
        mem = mem + raw["mem_w"][None, :, k:k + 1] * xpad[:, :, k * d:k * d + T]
    mem_out = prelu(bn(mem, raw["bn_m"])) + x

    h = jnp.einsum("hm,bmt->bht", raw["w1"], mem_out, precision=hi) + raw["b1"][None, :, None]
    h = prelu(bn(h, raw["bn_1"]))
    f = jnp.einsum("mh,bht->bmt", raw["w2"], h, precision=hi) + raw["b2"][None, :, None]
    f = prelu(bn(f, raw["bn_2"]))
    return f + mem_out                   # dropout p=0.0 -> identity


def reference_from_folded(x, P, *, left, right, dilation):
    """Same folded math as the kernel (incl. the bf16 weight rounding) in f32:
    isolates the in-kernel activation-cast error for a tight check."""
    B, M, T = x.shape
    Mp = P["wmem"].shape[0]
    d = dilation
    K = left + right + 1
    ld, rd = left * d, right * d
    hi = jax.lax.Precision.HIGHEST

    xq = jnp.pad(x, ((0, 0), (0, Mp - M), (0, 0)))
    xpad = jnp.pad(xq, ((0, 0), (0, 0), (ld, rd)))
    mem = P["pmem"][None, :, 0:1]
    for k in range(K):
        mem = mem + P["wmem"][None, :, k:k + 1] * xpad[:, :, k * d:k * d + T]
    mem = jnp.where(mem >= 0, mem, P["pmem"][None, :, 1:2] * mem)
    mem_out = mem + xq

    w1 = P["w1"].astype(jnp.float32)
    h = jnp.einsum("hm,bmt->bht", w1, mem_out, precision=hi) + P["p1"][None, :, 0:1]
    h = jnp.where(h >= 0, h, P["p1"][None, :, 1:2] * h)
    w2 = P["w2"].astype(jnp.float32)
    f = jnp.einsum("mh,bht->bmt", w2, h, precision=hi) + P["p2"][None, :, 0:1]
    f = jnp.where(f >= 0, f, P["p2"][None, :, 1:2] * f)
    return (f + mem_out)[:, :M, :]


# -----------------------------------------------------------------------------
# Demo / self-test
# -----------------------------------------------------------------------------
if __name__ == "__main__":
    # Shapes consistent with the module: input_feat is (batch, backbone_memory, T)
    B, M, H, T = 2, 16, 32, 16
    LEFT, RIGHT, DIL = 2, 1, 1
    K = LEFT + RIGHT + 1

    root = jax.random.PRNGKey(0)
    kx, kparam = jax.random.split(root)
    x = jax.random.normal(kx, (B, M, T), jnp.float32)
    raw = make_raw_params(kparam, M, H, K)
    folded = fold_params(raw)            # channel-padded, BN-folded, bf16 MXU weights

    out = bidfsmn_forward(x, folded, left=LEFT, right=RIGHT, dilation=DIL)
    out = jax.block_until_ready(out)
    assert out.shape == (B, M, T)

    ref_fold = reference_from_folded(x, folded, left=LEFT, right=RIGHT, dilation=DIL)
    ref_raw = reference_forward(x, raw, left=LEFT, right=RIGHT, dilation=DIL)
    err_fold = float(jnp.max(jnp.abs(out - ref_fold)))
    err_raw = float(jnp.max(jnp.abs(out - ref_raw)))

    # Tight check: same (bf16-rounded) weights as the kernel -> only the
    # in-kernel activation bf16 casts differ.
    assert jnp.allclose(out, ref_fold, rtol=2e-2, atol=2e-2), f"folded max err {err_fold}"
    # End-to-end check vs. the un-folded f32 PyTorch-sequence reference
    # (validates the BN/bias folding); bf16 weights in the kernel -> looser tol.
    assert jnp.allclose(out, ref_raw, rtol=5e-2, atol=5e-2), f"raw max err {err_raw}"
    print("KERNEL_OK")
</pallas_src>

<mosaic_0001>
module attributes {stable_mosaic.version = 11 : i64} {
  func.func @_bidfsmn_kernel(%arg0: i32, %arg1: i32, %arg2: memref<1x128x128xf32, #tpu.memory_space<vmem>>, %arg3: memref<1x1x128x3xf32, #tpu.memory_space<vmem>>, %arg4: memref<128x4xf32, #tpu.memory_space<vmem>>, %arg5: memref<128x2xf32, #tpu.memory_space<vmem>>, %arg6: memref<128x128xbf16, #tpu.memory_space<vmem>>, %arg7: memref<128x2xf32, #tpu.memory_space<vmem>>, %arg8: memref<128x128xbf16, #tpu.memory_space<vmem>>, %arg9: memref<128x2xf32, #tpu.memory_space<vmem>>, %arg10: memref<1x128x128xf32, #tpu.memory_space<vmem>>, %arg11: memref<128x131xf32, #tpu.memory_space<vmem>>) attributes {dimension_semantics = [#tpu.dimension_semantics<parallel>, #tpu.dimension_semantics<parallel>], iteration_bounds = array<i64: 2, 1>, scalar_prefetch = 0 : i64, scratch_operands = 1 : i64, tpu.core_type = #tpu.core_type<tc>, window_params = [{transform_indices = @transform_0, window_bounds = array<i64: 1, 128, 128>}, {transform_indices = @transform_1, window_bounds = array<i64: 1, 1, 128, 3>}, {pipeline_mode = #tpu.pipeline_mode<synchronous>, transform_indices = @transform_2, window_bounds = array<i64: 128, 4>}, {pipeline_mode = #tpu.pipeline_mode<synchronous>, transform_indices = @transform_3, window_bounds = array<i64: 128, 2>}, {pipeline_mode = #tpu.pipeline_mode<synchronous>, transform_indices = @transform_4, window_bounds = array<i64: 128, 128>}, {pipeline_mode = #tpu.pipeline_mode<synchronous>, transform_indices = @transform_5, window_bounds = array<i64: 128, 2>}, {pipeline_mode = #tpu.pipeline_mode<synchronous>, transform_indices = @transform_6, window_bounds = array<i64: 128, 128>}, {pipeline_mode = #tpu.pipeline_mode<synchronous>, transform_indices = @transform_7, window_bounds = array<i64: 128, 2>}, {transform_indices = @transform_8, window_bounds = array<i64: 1, 128, 128>}]} {
    %c0 = arith.constant 0 : index
    %c0_0 = arith.constant 0 : index
    %c0_1 = arith.constant 0 : index
    %0 = vector.load %arg2[%c0, %c0_0, %c0_1] : memref<1x128x128xf32, #tpu.memory_space<vmem>>, vector<1x128x128xf32>
    %1 = vector.shape_cast %0 : vector<1x128x128xf32> to vector<128x128xf32>
    %c0_2 = arith.constant 0 : index
    %c0_3 = arith.constant 0 : index
    %c0_4 = arith.constant 0 : index
    %c0_5 = arith.constant 0 : index
    %2 = vector.load %arg3[%c0_2, %c0_3, %c0_4, %c0_5] : memref<1x1x128x3xf32, #tpu.memory_space<vmem>>, vector<1x1x128x2xf32>
    %3 = vector.shape_cast %2 : vector<1x1x128x2xf32> to vector<128x2xf32>
    %c0_6 = arith.constant 0 : index
    %c0_7 = arith.constant 0 : index
    %4 = vector.load %arg11[%c0_6, %c0_7] : memref<128x131xf32, #tpu.memory_space<vmem>>, vector<128x2xf32>
    tpu.vector_store %arg11[%c0_6, %c0_7], %3 {strides = array<i32>} : memref<128x131xf32, #tpu.memory_space<vmem>>, vector<128x2xf32>,
    %c0_8 = arith.constant 0 : index
    %c2 = arith.constant 2 : index
    %5 = vector.load %arg11[%c0_8, %c2] : memref<128x131xf32, #tpu.memory_space<vmem>>, vector<128x128xf32>
    tpu.vector_store %arg11[%c0_8, %c2], %1 {strides = array<i32>} : memref<128x131xf32, #tpu.memory_space<vmem>>, vector<128x128xf32>,
    %c0_9 = arith.constant 0 : index
    %c0_10 = arith.constant 0 : index
    %c0_11 = arith.constant 0 : index
    %c2_12 = arith.constant 2 : index
    %6 = vector.load %arg3[%c0_9, %c0_10, %c0_11, %c2_12] : memref<1x1x128x3xf32, #tpu.memory_space<vmem>>, vector<1x1x128x1xf32>
    %7 = vector.shape_cast %6 : vector<1x1x128x1xf32> to vector<128x1xf32>
    %c0_13 = arith.constant 0 : index
    %c130 = arith.constant 130 : index
    %8 = vector.load %arg11[%c0_13, %c130] : memref<128x131xf32, #tpu.memory_space<vmem>>, vector<128x1xf32>
    tpu.vector_store %arg11[%c0_13, %c130], %7 {strides = array<i32>} : memref<128x131xf32, #tpu.memory_space<vmem>>, vector<128x1xf32>,
    %c0_14 = arith.constant 0 : index
    %c0_15 = arith.constant 0 : index
    %9 = vector.load %arg11[%c0_14, %c0_15] : memref<128x131xf32, #tpu.memory_space<vmem>>, vector<128x128xf32>
    %c0_16 = arith.constant 0 : index
    %c0_17 = arith.constant 0 : index
    %10 = vector.load %arg4[%c0_16, %c0_17] : memref<128x4xf32, #tpu.memory_space<vmem>>, vector<128x1xf32>
    %11 = vector.broadcast %10 : vector<128x1xf32> to vector<128x128xf32>
    %12 = arith.mulf %9, %11 : vector<128x128xf32>
    %c0_18 = arith.constant 0 : index
    %c1 = arith.constant 1 : index
    %13 = vector.load %arg11[%c0_18, %c1] : memref<128x131xf32, #tpu.memory_space<vmem>>, vector<128x128xf32>
    %c0_19 = arith.constant 0 : index
    %c1_20 = arith.constant 1 : index
    %14 = vector.load %arg4[%c0_19, %c1_20] : memref<128x4xf32, #tpu.memory_space<vmem>>, vector<128x1xf32>
    %15 = vector.broadcast %14 : vector<128x1xf32> to vector<128x128xf32>
    %16 = arith.mulf %13, %15 : vector<128x128xf32>
    %17 = arith.addf %12, %16 : vector<128x128xf32>
    %c0_21 = arith.constant 0 : index
    %c2_22 = arith.constant 2 : index
    %18 = vector.load %arg11[%c0_21, %c2_22] : memref<128x131xf32, #tpu.memory_space<vmem>>, vector<128x128xf32>
    %c0_23 = arith.constant 0 : index
    %c2_24 = arith.constant 2 : index
    %19 = vector.load %arg4[%c0_23, %c2_24] : memref<128x4xf32, #tpu.memory_space<vmem>>, vector<128x1xf32>
    %20 = vector.broadcast %19 : vector<128x1xf32> to vector<128x128xf32>
    %21 = arith.mulf %18, %20 : vector<128x128xf32>
    %22 = arith.addf %17, %21 : vector<128x128xf32>
    %c0_25 = arith.constant 0 : index
    %c3 = arith.constant 3 : index
    %23 = vector.load %arg11[%c0_25, %c3] : memref<128x131xf32, #tpu.memory_space<vmem>>, vector<128x128xf32>
    %c0_26 = arith.constant 0 : index
    %c3_27 = arith.constant 3 : index
    %24 = vector.load %arg4[%c0_26, %c3_27] : memref<128x4xf32, #tpu.memory_space<vmem>>, vector<128x1xf32>
    %25 = vector.broadcast %24 : vector<128x1xf32> to vector<128x128xf32>
    %26 = arith.mulf %23, %25 : vector<128x128xf32>
    %27 = arith.addf %22, %26 : vector<128x128xf32>
    %c0_28 = arith.constant 0 : index
    %c0_29 = arith.constant 0 : index
    %28 = vector.load %arg5[%c0_28, %c0_29] : memref<128x2xf32, #tpu.memory_space<vmem>>, vector<128x1xf32>
    %29 = vector.broadcast %28 : vector<128x1xf32> to vector<128x128xf32>
    %30 = arith.addf %27, %29 : vector<128x128xf32>
    %cst = arith.constant 0.000000e+00 : f32
    %31 = vector.broadcast %cst : f32 to vector<128x128xf32>
    %32 = arith.cmpf oge, %30, %31 : vector<128x128xf32>
    %c0_30 = arith.constant 0 : index
    %c1_31 = arith.constant 1 : index
    %33 = vector.load %arg5[%c0_30, %c1_31] : memref<128x2xf32, #tpu.memory_space<vmem>>, vector<128x1xf32>
    %34 = vector.broadcast %33 : vector<128x1xf32> to vector<128x128xf32>
    %35 = arith.mulf %34, %30 : vector<128x128xf32>
    %36 = arith.select %32, %30, %35 : vector<128x128xi1>, vector<128x128xf32>
    %37 = arith.addf %36, %1 : vector<128x128xf32>
    %c0_32 = arith.constant 0 : index
    %c0_33 = arith.constant 0 : index
    %38 = vector.load %arg11[%c0_32, %c0_33] : memref<128x131xf32, #tpu.memory_space<vmem>>, vector<128x128xf32>
    tpu.vector_store %arg11[%c0_32, %c0_33], %37 {strides = array<i32>} : memref<128x131xf32, #tpu.memory_space<vmem>>, vector<128x128xf32>,
    %c0_34 = arith.constant 0 : index
    %c0_35 = arith.constant 0 : index
    %39 = vector.load %arg6[%c0_34, %c0_35] : memref<128x128xbf16, #tpu.memory_space<vmem>>, vector<128x128xbf16>
    %40 = arith.truncf %37 : vector<128x128xf32> to vector<128x128xbf16>
    %cst_36 = arith.constant dense<0.000000e+00> : vector<128x128xf32>
    %41 = tpu.matmul %39, %40, %cst_36 {dimension_numbers = #tpu.dot_dimension_numbers<[1], [0], [0], [1], [0, 0, 1, 1], [], []>} : vector<128x128xbf16>, vector<128x128xbf16>, vector<128x128xf32> -> vector<128x128xf32>
    %c0_37 = arith.constant 0 : index
    %c0_38 = arith.constant 0 : index
    %42 = vector.load %arg7[%c0_37, %c0_38] : memref<128x2xf32, #tpu.memory_space<vmem>>, vector<128x1xf32>
    %43 = vector.broadcast %42 : vector<128x1xf32> to vector<128x128xf32>
    %44 = arith.addf %41, %43 : vector<128x128xf32>
    %cst_39 = arith.constant 0.000000e+00 : f32
    %45 = vector.broadcast %cst_39 : f32 to vector<128x128xf32>
    %46 = arith.cmpf oge, %44, %45 : vector<128x128xf32>
    %c0_40 = arith.constant 0 : index
    %c1_41 = arith.constant 1 : index
    %47 = vector.load %arg7[%c0_40, %c1_41] : memref<128x2xf32, #tpu.memory_space<vmem>>, vector<128x1xf32>
    %48 = vector.broadcast %47 : vector<128x1xf32> to vector<128x128xf32>
    %49 = arith.mulf %48, %44 : vector<128x128xf32>
    %50 = arith.select %46, %44, %49 : vector<128x128xi1>, vector<128x128xf32>
    %c0_42 = arith.constant 0 : index
    %c0_43 = arith.constant 0 : index
    %51 = vector.load %arg8[%c0_42, %c0_43] : memref<128x128xbf16, #tpu.memory_space<vmem>>, vector<128x128xbf16>
    %52 = arith.truncf %50 : vector<128x128xf32> to vector<128x128xbf16>
    %cst_44 = arith.constant dense<0.000000e+00> : vector<128x128xf32>
    %53 = tpu.matmul %51, %52, %cst_44 {dimension_numbers = #tpu.dot_dimension_numbers<[1], [0], [0], [1], [0, 0, 1, 1], [], []>} : vector<128x128xbf16>, vector<128x128xbf16>, vector<128x128xf32> -> vector<128x128xf32>
    %c0_45 = arith.constant 0 : index
    %c0_46 = arith.constant 0 : index
    %54 = vector.load %arg9[%c0_45, %c0_46] : memref<128x2xf32, #tpu.memory_space<vmem>>, vector<128x1xf32>
    %55 = vector.broadcast %54 : vector<128x1xf32> to vector<128x128xf32>
    %56 = arith.addf %53, %55 : vector<128x128xf32>
    %cst_47 = arith.constant 0.000000e+00 : f32
    %57 = vector.broadcast %cst_47 : f32 to vector<128x128xf32>
    %58 = arith.cmpf oge, %56, %57 : vector<128x128xf32>
    %c0_48 = arith.constant 0 : index
    %c1_49 = arith.constant 1 : index
    %59 = vector.load %arg9[%c0_48, %c1_49] : memref<128x2xf32, #tpu.memory_space<vmem>>, vector<128x1xf32>
    %60 = vector.broadcast %59 : vector<128x1xf32> to vector<128x128xf32>
    %61 = arith.mulf %60, %56 : vector<128x128xf32>
    %62 = arith.select %58, %56, %61 : vector<128x128xi1>, vector<128x128xf32>
    %c0_50 = arith.constant 0 : index
    %c0_51 = arith.constant 0 : index
    %63 = vector.load %arg11[%c0_50, %c0_51] : memref<128x131xf32, #tpu.memory_space<vmem>>, vector<128x128xf32>
    %64 = arith.addf %62, %63 : vector<128x128xf32>
    %c0_52 = arith.constant 0 : index
    %c0_53 = arith.constant 0 : index
    %c0_54 = arith.constant 0 : index
    %65 = vector.load %arg10[%c0_52, %c0_53, %c0_54] : memref<1x128x128xf32, #tpu.memory_space<vmem>>, vector<1x128x128xf32>
    %66 = vector.shape_cast %65 : vector<1x128x128xf32> to vector<128x128xf32>
    %67 = vector.shape_cast %64 : vector<128x128xf32> to vector<1x128x128xf32>
    tpu.vector_store %arg10[%c0_52, %c0_53, %c0_54], %67 {strides = array<i32>} : memref<1x128x128xf32, #tpu.memory_space<vmem>>, vector<1x128x128xf32>,
    return
  }
  func.func @transform_0(%arg0: i32, %arg1: i32) -> (i32, i32, i32) {
    %c0_i32 = arith.constant 0 : i32
    %c0_i32_0 = arith.constant 0 : i32
    return %arg0, %c0_i32, %arg1 : i32, i32, i32
  }
  func.func @transform_1(%arg0: i32, %arg1: i32) -> (i32, i32, i32, i32) {
    %c0_i32 = arith.constant 0 : i32
    %c0_i32_0 = arith.constant 0 : i32
    %c0_i32_1 = arith.constant 0 : i32
    return %arg0, %arg1, %c0_i32, %c0_i32_0 : i32, i32, i32, i32
  }
  func.func @transform_2(%arg0: i32, %arg1: i32) -> (i32, i32) {
    %c0_i32 = arith.constant 0 : i32
    %c0_i32_0 = arith.constant 0 : i32
    %c0_i32_1 = arith.constant 0 : i32
    return %c0_i32, %c0_i32_0 : i32, i32
  }
  func.func @transform_3(%arg0: i32, %arg1: i32) -> (i32, i32) {
    %c0_i32 = arith.constant 0 : i32
    %c0_i32_0 = arith.constant 0 : i32
    %c0_i32_1 = arith.constant 0 : i32
    return %c0_i32, %c0_i32_0 : i32, i32
  }
  func.func @transform_4(%arg0: i32, %arg1: i32) -> (i32, i32) {
    %c0_i32 = arith.constant 0 : i32
    %c0_i32_0 = arith.constant 0 : i32
    %c0_i32_1 = arith.constant 0 : i32
    return %c0_i32, %c0_i32_0 : i32, i32
  }
  func.func @transform_5(%arg0: i32, %arg1: i32) -> (i32, i32) {
    %c0_i32 = arith.constant 0 : i32
    %c0_i32_0 = arith.constant 0 : i32
    %c0_i32_1 = arith.constant 0 : i32
    return %c0_i32, %c0_i32_0 : i32, i32
  }
  func.func @transform_6(%arg0: i32, %arg1: i32) -> (i32, i32) {
    %c0_i32 = arith.constant 0 : i32
    %c0_i32_0 = arith.constant 0 : i32
    %c0_i32_1 = arith.constant 0 : i32
    return %c0_i32, %c0_i32_0 : i32, i32
  }
  func.func @transform_7(%arg0: i32, %arg1: i32) -> (i32, i32) {
    %c0_i32 = arith.constant 0 : i32
    %c0_i32_0 = arith.constant 0 : i32
    %c0_i32_1 = arith.constant 0 : i32
    return %c0_i32, %c0_i32_0 : i32, i32
  }
  func.func @transform_8(%arg0: i32, %arg1: i32) -> (i32, i32, i32) {
    %c0_i32 = arith.constant 0 : i32
    %c0_i32_0 = arith.constant 0 : i32
    return %arg0, %c0_i32, %arg1 : i32, i32, i32
  }
}

</mosaic_0001>

<bundles_post_ra>
// kernel: tpu_custom_call.1
= control target key start
LH: loop header
LB: loop body
LE: loop exit
PB: predicated region body
PF: predicated region fallthrough
CT: control target
= control target key end

     0   :  { %13 = vsyncpa [#allocation4], 0  ;;  %s4467_s0 = inlined_call_operand.vmem [shape: f32[2,128,128], index: 0, kind: input, shape index: {}]   ;;  %s4468_s1 = inlined_call_operand.vmem [shape: f32[2,1,128,3], index: 1, kind: input, shape index: {}]   ;;  %s4469_s2 = inlined_call_operand.vmem [shape: f32[128,4], index: 2, kind: input, shape index: {}]   ;;  %s4470_s3 = inlined_call_operand.vmem [shape: f32[128,2], index: 3, kind: input, shape index: {}]   ;;  %s4471_s4 = inlined_call_operand.vmem [shape: bf16[128,128], index: 4, kind: input, shape index: {}]   ;;  %s4472_s5 = inlined_call_operand.vmem [shape: f32[128,2], index: 5, kind: input, shape index: {}]   ;;  %s4473_s6 = inlined_call_operand.vmem [shape: bf16[128,128], index: 6, kind: input, shape index: {}]   ;;  %s4474_s7 = inlined_call_operand.vmem [shape: f32[128,2], index: 7, kind: input, shape index: {}]   ;;  %s4475_s8 = inlined_call_operand.hbm [shape: f32[2,128,128], index: 8, kind: output, shape index: {}]  }
   0x1   :  { %15 = vsyncpa [#allocation4 + $0x1], 0  ;;  %s2870_s27 = smov 0   ;;  %s2872_s28 = smov 0  }
   0x2   :  { %s2874_s29 = smov 0   ;;  %s2876_s30 = smov 0  }
   0x3   :  { %s2878_s9 = smov 0   ;;  %s2880_s10 = smov 0  }
   0x4 LB: > { %s2503_s11 = sadd.s32 4294967295, %s2813_s10   ;;  %s2504_s12 = sadd.s32 4294967294, %s2813_s10   ;;  %s2813_s10 = sphi %s2880_s10, %s21_s10   ;;  %s2809_s9 = sphi %s2878_s9, %s4615_s9   ;;  %s2805_s30 = sphi %s2876_s30, %s4614_s30   ;;  %s2801_s29 = sphi %s2874_s29, %s4613_s29   ;;  %s2797_s28 = sphi %s2872_s28, %s4612_s28   ;;  %s2793_s27 = sphi %s2870_s27, %s4611_s27  }
   0x5   : > { %s33_s13 = sadd.s32 1, %s2809_s9  ;;  %s224_s14 = sadd.s32 1, %s2801_s29 }
   0x6   : > { %p35_p0 = scmp.ge.s32.totalorder %s33_s13, 2  ;;  %p234_p1 = scmp.ne.s32.totalorder %s2801_s29, %s2797_s28 }
   0x7   : > { %p235_p2 = scmp.eq.s32.totalorder %s2503_s11, 1  ;;  %p240_p3 = scmp.ne.s32.totalorder %s2797_s28, %s2793_s27 }
   0x8   : > { %s4617_s13 = smov (%p35_p0, %s33_s13), 0  ;;  %p241_p5 = scmp.eq.s32.totalorder %s2504_s12, 1 }
   0x9   : > { %p2910_p4 = por %p235_p2, %p234_p1  ;;  %s219_s16 = ssub.s32 %s2809_s9, %s4617_s13 }
   0xa   : > { %p2507_p6 = scmp.ge.s32.totalorder %s2813_s10, 1  ;;  %p222_p7 = scmp.eq.s32.totalorder %s219_s16, 0 }
   0xb   : > { %p2917_p8 = por %p241_p5, %p240_p3  ;;  %p300_p9 = scmp.lt.s32.totalorder %s2813_s10, 3 }
   0xc   : > { %s2923_s18 = scalar_select %p222_p7, %s2801_s29, %s224_s14  }
   0xd   : > { %p301_p10 = pnand %p2507_p6, %p300_p9 }
   0xf   : > { %304 = sbr.rel (%p301_p10) target bundleno = 1351 (0x547), region = 52 }
  0x14   : > { %p346_p11 = scmp.lt.s32.totalorder %s2805_s30, 1  ;;  %s2815_s24 = smov 2   ;;  %v4478_v3 = vmov 0   ;;  %v4476_v7 = vmov 1   ;;  %v2973_v17 = vld [vmem:[%s4469_s2 + $0x8] sm:$0xff]  ;;  %v2978_v18 = vld [vmem:[%s4469_s2] sm:$0xff] }
  0x15   : > { %2683 = vset.pattern.permute.xlu2 %v4478_v3  ;;  %2682 = vset.pattern.permute.xlu1 %v4478_v3  ;;  %v2987_v20 = vld [vmem:[%s4469_s2 + $0x20] sm:$0xff]  ;;  %v2992_v21 = vld [vmem:[%s4469_s2 + $0x18] sm:$0xff]  ;;  %v3000_v22 = vld [vmem:[%s4469_s2 + $0x30] sm:$0xff]  ;;  %vm395_vm0 = vcmask 15360   ;;  %vm476_vm1 = vcmask 1047568   ;;  %vm525_vm2 = vcmask 23568  }
  0x16   : > { %s2927_s19 = scalar_select %p346_p11, %s2805_s30, 1  ;;  %2684 = vset.pattern.permute.xlu0 %v4476_v7  ;;  %v3005_v23 = vld [vmem:[%s4469_s2 + $0x28] sm:$0xff]  ;;  %v3027_v26 = vld [vmem:[%s4469_s2 + $0x40] sm:$0xff]  ;;  %v3042_v29 = vld [vmem:[%s4469_s2 + $0x58] sm:$0xff]  ;;  %vm894_vm3 = vcmask 1039360   ;;  %vm1135_vm4 = vcmask 1031168  }
  0x17   : > { %v3022_v25 = vld [vmem:[%s4469_s2 + $0x48] sm:$0xff]  ;;  %v3037_v28 = vld [vmem:[%s4469_s2 + $0x60] sm:$0xff]  ;;  %v3052_v31 = vld [vmem:[%s4469_s2 + $0x78] sm:$0xff]  ;;  %s2820_s21 = smov 126   ;;  %vm1376_vm5 = vcmask 1022976   ;;  %s343_s22 = sand.u32 1, %s2797_s28  }
  0x18   : > { %s2582_s20 = sshll.u32 %s2927_s19, 7  ;;  %v3057_v32 = vld [vmem:[%s4469_s2 + $0x70] sm:$0xff]  ;;  %v3094_v42 = vld [vmem:[%s4469_s2 + $0x38] sm:$0xff]  ;;  %v3123_v52 = vld [vmem:[%s4469_s2 + $0x68] sm:$0xff]  ;;  %s2822_s19 = smov 125  }
  0x19   : > { %s2935_s23 = scalar_lea.vmem %s4467_s0, %s2582_s20  ;;  %s3012_s16 = scalar_lea.vmem %s4468_s1, %s2582_s20  ;;  %v3069_v35 = vld [vmem:[%s4469_s2 + $0x10] sm:$0xff] }
  0x1a   : > { %v367_v0 = vld [vmem:[%s2935_s23 + $0x20] sm:$0xff]  ;;  %v365_v1 = vld [vmem:[%s2935_s23 + $0x10] sm:$0xff]  ;;  %v368_v4 = vld [vmem:[%s2935_s23 + $0x28] sm:$0xff]  ;;  %s2508_s25 = sshll.u32 %s343_s22, 7 }
  0x1b   : > { %v363_v2 = vld [vmem:[%s2935_s23] sm:$0xff]  ;;  %436 = vrot.lane.b32.xlu2 %v367_v0, %s2815_s24  ;;  %432 = vrot.lane.b32.xlu1 %v365_v1, %s2815_s24  ;;  %v366_v5 = vld [vmem:[%s2935_s23 + $0x18] sm:$0xff]  ;;  %s4381_s26 = scalar_lea.vmem [#allocation3], %s2508_s25 }
  0x1c   : > { %428 = vrot.lane.b32.xlu0 %v363_v2, %s2815_s24  ;;  %v364_v6 = vld [vmem:[%s2935_s23 + $0x8] sm:$0xff]  ;;  %v371_v8 = vld [vmem:[%s2935_s23 + $0x40] sm:$0xff]  ;;  %v370_v9 = vld [vmem:[%s2935_s23 + $0x38] sm:$0xff] }
  0x1d   : > { %v369_v10 = vld [vmem:[%s2935_s23 + $0x30] sm:$0xff]  ;;  %v374_v11 = vld [vmem:[%s2935_s23 + $0x58] sm:$0xff]  ;;  %v372_v13 = vld [vmem:[%s2935_s23 + $0x48] sm:$0xff] }
  0x1e   : > { %v373_v12 = vld [vmem:[%s2935_s23 + $0x50] sm:$0xff]  ;;  %v376_v15 = vld [vmem:[%s2935_s23 + $0x68] sm:$0xff]  ;;  %v375_v16 = vld [vmem:[%s2935_s23 + $0x60] sm:$0xff] }
  0x1f   : > { %v377_v14 = vld [vmem:[%s2935_s23 + $0x70] sm:$0xff]  ;;  %v378_v19 = vld [vmem:[%s2935_s23 + $0x78] sm:$0xff]  ;;  %v383_v24 = vld [vmem:[%s3012_s16 + $0x20] sm:$0xff] }
  0x20   : > { %400 = vst.msk [vmem:[#allocation2 + $0x40] sm:$0xff] %vm395_vm0, %v383_v24  ;;  %v384_v27 = vld [vmem:[%s3012_s16 + $0x28] sm:$0xff]  ;;  %v387_v30 = vld [vmem:[%s3012_s16 + $0x40] sm:$0xff]  ;;  %v390_v33 = vld [vmem:[%s3012_s16 + $0x58] sm:$0xff] }
  0x21   : > { %401 = vst.msk [vmem:[#allocation2 + $0x50] sm:$0xff] %vm395_vm0, %v384_v27  ;;  %v381_v34 = vld [vmem:[%s3012_s16 + $0x10] sm:$0xff]  ;;  %v379_v36 = vld [vmem:[%s3012_s16] sm:$0xff]  ;;  %v382_v39 = vld [vmem:[%s3012_s16 + $0x18] sm:$0xff] }
  0x22   : > { %404 = vst.msk [vmem:[#allocation2 + $0x80] sm:$0xff] %vm395_vm0, %v387_v30  ;;  %v393_v38 = vld [vmem:[%s3012_s16 + $0x70] sm:$0xff]  ;;  %v380_v40 = vld [vmem:[%s3012_s16 + $0x8] sm:$0xff]  ;;  %v386_v43 = vld [vmem:[%s3012_s16 + $0x38] sm:$0xff] }
  0x23   : > { %438 = vrot.lane.b32.xlu2 %v368_v4, %s2815_s24  ;;  %434 = vrot.lane.b32.xlu1 %v366_v5, %s2815_s24  ;;  %407 = vst.msk [vmem:[#allocation2 + $0xb0] sm:$0xff] %vm395_vm0, %v390_v33  ;;  %v385_v45 = vld [vmem:[%s3012_s16 + $0x30] sm:$0xff]  ;;  %v388_v47 = vld [vmem:[%s3012_s16 + $0x48] sm:$0xff] }
  0x24   : > { %430 = vrot.lane.b32.xlu0 %v364_v6, %s2815_s24  ;;  %398 = vst.msk [vmem:[#allocation2 + $0x20] sm:$0xff] %vm395_vm0, %v381_v34  ;;  %v389_v46 = vld [vmem:[%s3012_s16 + $0x50] sm:$0xff]  ;;  %v392_v62 = vld [vmem:[%s3012_s16 + $0x68] sm:$0xff]  ;;  %v391_v63 = vld [vmem:[%s3012_s16 + $0x60] sm:$0xff] }
  0x25   : > { %396 = vst.msk [vmem:[#allocation2] sm:$0xff] %vm395_vm0, %v379_v36  ;;  %v3109_v48 = vld [vmem:[%s4469_s2 + $0x50] sm:$0xff]  ;;  %v394_v4 = vld [vmem:[%s3012_s16 + $0x78] sm:$0xff]  ;;  %s2818_s16 = smov 127  }
  0x26   : > { %410 = vst.msk [vmem:[#allocation2 + $0xe0] sm:$0xff] %vm395_vm0, %v393_v38 }
  0x27   : > { %399 = vst.msk [vmem:[#allocation2 + $0x30] sm:$0xff] %vm395_vm0, %v382_v39 }
  0x28   : > { %397 = vst.msk [vmem:[#allocation2 + $0x10] sm:$0xff] %vm395_vm0, %v380_v40 }
  0x29   : > { %403 = vst.msk [vmem:[#allocation2 + $0x70] sm:$0xff] %vm395_vm0, %v386_v43 }
  0x2a   : > { %402 = vst.msk [vmem:[#allocation2 + $0x60] sm:$0xff] %vm395_vm0, %v385_v45 }
  0x2b   : > { %444 = vrot.lane.b32.xlu2 %v371_v8, %s2815_s24  ;;  %442 = vrot.lane.b32.xlu1 %v370_v9, %s2815_s24  ;;  %406 = vst.msk [vmem:[#allocation2 + $0xa0] sm:$0xff] %vm395_vm0, %v389_v46 }
  0x2c   : > { %440 = vrot.lane.b32.xlu0 %v369_v10, %s2815_s24  ;;  %405 = vst.msk [vmem:[#allocation2 + $0x90] sm:$0xff] %vm395_vm0, %v388_v47 }
  0x2d   : > { %409 = vst.msk [vmem:[#allocation2 + $0xd0] sm:$0xff] %vm395_vm0, %v392_v62 }
  0x2e   : > { %408 = vst.msk [vmem:[#allocation2 + $0xc0] sm:$0xff] %vm395_vm0, %v391_v63 }
  0x2f   : > { %411 = vst.msk [vmem:[#allocation2 + $0xf0] sm:$0xff] %vm395_vm0, %v394_v4 }
  0x33   : > { %450 = vrot.lane.b32.xlu2 %v374_v11, %s2815_s24  ;;  %448 = vrot.lane.b32.xlu1 %v373_v12, %s2815_s24 }
  0x34   : > { %446 = vrot.lane.b32.xlu0 %v372_v13, %s2815_s24 }
  0x3b   : > { %456 = vrot.lane.b32.xlu2 %v377_v14, %s2815_s24  ;;  %454 = vrot.lane.b32.xlu1 %v376_v15, %s2815_s24 }
  0x3c   : > { %452 = vrot.lane.b32.xlu0 %v375_v16, %s2815_s24 }
  0x43   : > { %581 = vperm.xlu2 %2683, %v2973_v17   ;;  %576 = vperm.xlu1 %2682, %v2978_v18  }
  0x44   : > { %458 = vrot.lane.b32.xlu0 %v378_v19, %s2815_s24  ;;  %s2600_s24 = sshll.u32 %s2805_s30, 7 }
  0x45   : > { %s2400_s14 = scalar_lea.hbm %s4475_s8, %s2600_s24  ;;  %s2755_s24 = scalar_lea.hbm %s4475_s8, 256 }
  0x46   : > { %s2403_s30 = sshll.u32 %s2400_s14, 4  ;;  %s2404_s30 = int_to_ptr.hbm [resolvable:$true] %s2403_s30 }
  0x4b   : > { %596 = vperm.xlu2 %2683, %v2987_v20   ;;  %591 = vperm.xlu1 %2682, %v2992_v21  }
  0x4c   : > { %703 = vperm.xlu0 %2684, %v2978_v18  }
  0x53   : > { %606 = vperm.xlu2 %2683, %v3000_v22   ;;  %601 = vperm.xlu1 %2682, %v3005_v23  }
  0x54   : > { %723 = vperm.xlu0 %2684, %v3005_v23  }
  0x5b   : > { %621 = vperm.xlu2 %2683, %v3022_v25   ;;  %616 = vperm.xlu1 %2682, %v3027_v26  }
  0x5c   : > { %735 = vperm.xlu0 %2684, %v3027_v26  }
  0x63   : > { %636 = vperm.xlu2 %2683, %v3037_v28   ;;  %631 = vperm.xlu1 %2682, %v3042_v29  }
  0x64   : > { %747 = vperm.xlu0 %2684, %v3042_v29  }
  0x6b   : > { %651 = vperm.xlu2 %2683, %v3052_v31   ;;  %646 = vperm.xlu1 %2682, %v3057_v32  }
  0x6c   : > { %759 = vperm.xlu0 %2684, %v3057_v32  }
  0x73   : > { %2686 = vset.pattern.permute.xlu2 %v4476_v7  ;;  %2685 = vset.pattern.permute.xlu1 %v4476_v7 }
  0x74   : > { %711 = vperm.xlu2 %2686, %v3069_v35   ;;  %707 = vperm.xlu1 %2685, %v2973_v17  }
  0x75   : > { %v437_v37 = vpop.permute.xlu2 %436 }
  0x76   : > { %485 = vst.msk [vmem:[#allocation2 + $0x40] sm:$0xff] %vm476_vm1, %v437_v37 }
  0x77   : > { %486 = vst.msk [vmem:[#allocation2 + $0x48] sm:$0xff] %vm395_vm0, %v437_v37 }
  0x78   : > { %530 = vst.msk [vmem:[#allocation2 + $0x48] sm:$0xff] %vm525_vm2, %v383_v24 }
  0x7c   : > { %719 = vperm.xlu2 %2686, %v2987_v20   ;;  %715 = vperm.xlu1 %2685, %v2992_v21  }
  0x7d   : > { %v439_v41 = vpop.permute.xlu2 %438 }
  0x7e   : > { %487 = vst.msk [vmem:[#allocation2 + $0x50] sm:$0xff] %vm476_vm1, %v439_v41 }
  0x7f   : > { %488 = vst.msk [vmem:[#allocation2 + $0x58] sm:$0xff] %vm395_vm0, %v439_v41 }
  0x80   : > { %531 = vst.msk [vmem:[#allocation2 + $0x58] sm:$0xff] %vm525_vm2, %v384_v27 }
  0x84   : > { %731 = vperm.xlu2 %2686, %v3094_v42   ;;  %727 = vperm.xlu1 %2685, %v3000_v22  }
  0x85   : > { %v445_v44 = vpop.permute.xlu2 %444 }
  0x86   : > { %493 = vst.msk [vmem:[#allocation2 + $0x80] sm:$0xff] %vm476_vm1, %v445_v44 }
  0x87   : > { %494 = vst.msk [vmem:[#allocation2 + $0x88] sm:$0xff] %vm395_vm0, %v445_v44 }
  0x88   : > { %534 = vst.msk [vmem:[#allocation2 + $0x88] sm:$0xff] %vm525_vm2, %v387_v30 }
  0x8c   : > { %743 = vperm.xlu2 %2686, %v3109_v48   ;;  %739 = vperm.xlu1 %2685, %v3022_v25  }
  0x8d   : > { %v451_v49 = vpop.permute.xlu2 %450  ;;  %v433_v50 = vpop.permute.xlu1 %432 }
  0x8e   : > { %499 = vst.msk [vmem:[#allocation2 + $0xb0] sm:$0xff] %vm476_vm1, %v451_v49  ;;  %v429_v51 = vpop.permute.xlu0 %428 }
  0x8f   : > { %500 = vst.msk [vmem:[#allocation2 + $0xb8] sm:$0xff] %vm395_vm0, %v451_v49 }
  0x90   : > { %537 = vst.msk [vmem:[#allocation2 + $0xb8] sm:$0xff] %vm525_vm2, %v390_v33 }
  0x91   : > { %481 = vst.msk [vmem:[#allocation2 + $0x20] sm:$0xff] %vm476_vm1, %v433_v50 }
  0x92   : > { %482 = vst.msk [vmem:[#allocation2 + $0x28] sm:$0xff] %vm395_vm0, %v433_v50 }
  0x93   : > { %528 = vst.msk [vmem:[#allocation2 + $0x28] sm:$0xff] %vm525_vm2, %v381_v34 }
  0x94   : > { %477 = vst.msk [vmem:[#allocation2] sm:$0xff] %vm476_vm1, %v429_v51  ;;  %755 = vperm.xlu2 %2686, %v3123_v52   ;;  %751 = vperm.xlu1 %2685, %v3037_v28  }
  0x95   : > { %478 = vst.msk [vmem:[#allocation2 + $0x8] sm:$0xff] %vm395_vm0, %v429_v51  ;;  %v457_v53 = vpop.permute.xlu2 %456  ;;  %v435_v54 = vpop.permute.xlu1 %434 }
  0x96   : > { %526 = vst.msk [vmem:[#allocation2 + $0x8] sm:$0xff] %vm525_vm2, %v379_v36  ;;  %v431_v55 = vpop.permute.xlu0 %430 }
  0x97   : > { %505 = vst.msk [vmem:[#allocation2 + $0xe0] sm:$0xff] %vm476_vm1, %v457_v53 }
  0x98   : > { %506 = vst.msk [vmem:[#allocation2 + $0xe8] sm:$0xff] %vm395_vm0, %v457_v53  ;;  %v3197_v30 = vld [vmem:[#allocation2 + $0x20] sm:$0xff] }
  0x99   : > { %540 = vst.msk [vmem:[#allocation2 + $0xe8] sm:$0xff] %vm525_vm2, %v393_v38 }
  0x9a   : > { %483 = vst.msk [vmem:[#allocation2 + $0x30] sm:$0xff] %vm476_vm1, %v435_v54 }
  0x9b   : > { %484 = vst.msk [vmem:[#allocation2 + $0x38] sm:$0xff] %vm395_vm0, %v435_v54  ;;  %v3185_v12 = vld [vmem:[#allocation2] sm:$0xff]  ;;  %v3225_v54 = vld [vmem:[#allocation2 + $0x48] sm:$0xff] }
  0x9c   : > { %529 = vst.msk [vmem:[#allocation2 + $0x38] sm:$0xff] %vm525_vm2, %v382_v39  ;;  %763 = vperm.xlu1 %2685, %v3052_v31  }
  0x9d   : > { %479 = vst.msk [vmem:[#allocation2 + $0x10] sm:$0xff] %vm476_vm1, %v431_v55  ;;  %v3140_v56 = vpop.permute.xlu2 %581  ;;  %v443_v57 = vpop.permute.xlu1 %442  ;;  %v3179_v9 = vld [vmem:[#allocation2 + $0x8] sm:$0xff] }
  0x9e   : > { %4489 = vst [vmem:[#allocation6_spill] sm:$0xff] %v3140_v56  ;;  %v441_v58 = vpop.permute.xlu0 %440 }
  0x9f   : > { %480 = vst.msk [vmem:[#allocation2 + $0x18] sm:$0xff] %vm395_vm0, %v431_v55  ;;  %v3227_v55 = vld [vmem:[#allocation2 + $0x40] sm:$0xff] }
  0xa0   : > { %527 = vst.msk [vmem:[#allocation2 + $0x18] sm:$0xff] %vm525_vm2, %v380_v40 }
  0xa1   : > { %491 = vst.msk [vmem:[#allocation2 + $0x70] sm:$0xff] %vm476_vm1, %v443_v57 }
  0xa2   : > { %492 = vst.msk [vmem:[#allocation2 + $0x78] sm:$0xff] %vm395_vm0, %v443_v57  ;;  %v3229_v57 = vld [vmem:[#allocation2 + $0x50] sm:$0xff] }
  0xa3   : > { %533 = vst.msk [vmem:[#allocation2 + $0x78] sm:$0xff] %vm525_vm2, %v386_v43  ;;  %v3213_v43 = vld [vmem:[#allocation2 + $0x28] sm:$0xff]  ;;  %v3215_v44 = vld [vmem:[#allocation2 + $0x38] sm:$0xff] }
  0xa4   : > { %489 = vst.msk [vmem:[#allocation2 + $0x60] sm:$0xff] %vm476_vm1, %v441_v58  ;;  %v3207_v38 = vld [vmem:[#allocation2 + $0x10] sm:$0xff] }
  0xa5   : > { %490 = vst.msk [vmem:[#allocation2 + $0x68] sm:$0xff] %vm395_vm0, %v441_v58  ;;  %v3150_v59 = vpop.permute.xlu2 %596  ;;  %v449_v60 = vpop.permute.xlu1 %448 }
  0xa6   : > { %532 = vst.msk [vmem:[#allocation2 + $0x68] sm:$0xff] %vm525_vm2, %v385_v45  ;;  %v447_v61 = vpop.permute.xlu0 %446 }
  0xa7   : > { %4490 = vst [vmem:[#allocation7_spill] sm:$0xff] %v3150_v59  ;;  %v3205_v37 = vld [vmem:[#allocation2 + $0x18] sm:$0xff] }
  0xa8   : > { %497 = vst.msk [vmem:[#allocation2 + $0xa0] sm:$0xff] %vm476_vm1, %v449_v60 }
  0xa9   : > { %498 = vst.msk [vmem:[#allocation2 + $0xa8] sm:$0xff] %vm395_vm0, %v449_v60 }
  0xaa   : > { %536 = vst.msk [vmem:[#allocation2 + $0xa8] sm:$0xff] %vm525_vm2, %v389_v46  ;;  %v3218_v46 = vld [vmem:[#allocation2 + $0x30] sm:$0xff] }
  0xab   : > { %495 = vst.msk [vmem:[#allocation2 + $0x90] sm:$0xff] %vm476_vm1, %v447_v61 }
  0xac   : > { %496 = vst.msk [vmem:[#allocation2 + $0x98] sm:$0xff] %vm395_vm0, %v447_v61 }
  0xad   : > { %535 = vst.msk [vmem:[#allocation2 + $0x98] sm:$0xff] %vm525_vm2, %v388_v47  ;;  %v3161_v0 = vpop.permute.xlu2 %606  ;;  %v455_v1 = vpop.permute.xlu1 %454 }
  0xae   : > { %4491 = vst [vmem:[#allocation8_spill] sm:$0xff] %v3161_v0  ;;  %v453_v2 = vpop.permute.xlu0 %452 }
  0xaf   : > { %503 = vst.msk [vmem:[#allocation2 + $0xd0] sm:$0xff] %vm476_vm1, %v455_v1 }
  0xb0   : > { %504 = vst.msk [vmem:[#allocation2 + $0xd8] sm:$0xff] %vm395_vm0, %v455_v1  ;;  %v3239_v1 = vld [vmem:[#allocation2 + $0x68] sm:$0xff] }
  0xb1   : > { %539 = vst.msk [vmem:[#allocation2 + $0xd8] sm:$0xff] %vm525_vm2, %v392_v62  ;;  %v3237_v62 = vld [vmem:[#allocation2 + $0x58] sm:$0xff] }
  0xb2   : > { %501 = vst.msk [vmem:[#allocation2 + $0xc0] sm:$0xff] %vm476_vm1, %v453_v2 }
  0xb3   : > { %502 = vst.msk [vmem:[#allocation2 + $0xc8] sm:$0xff] %vm395_vm0, %v453_v2  ;;  %v3241_v2 = vld [vmem:[#allocation2 + $0x60] sm:$0xff] }
  0xb4   : > { %538 = vst.msk [vmem:[#allocation2 + $0xc8] sm:$0xff] %vm525_vm2, %v391_v63 }
  0xb5   : > { %v3172_v5 = vpop.permute.xlu2 %621  ;;  %v3174_v6 = vpop.permute.xlu1 %576 }
  0xb6   : > { %4492 = vst [vmem:[#allocation9_spill] sm:$0xff] %v3172_v5  ;;  %v459_v8 = vpop.permute.xlu0 %458  ;;  %v3301_v3 = vld [vmem:[#allocation2 + $0xd0] sm:$0xff] }
  0xb7   : > { %4493 = vst [vmem:[#allocation10_spill] sm:$0xff] %v3174_v6 }
  0xb8   : > { %507 = vst.msk [vmem:[#allocation2 + $0xf0] sm:$0xff] %vm476_vm1, %v459_v8 }
  0xb9   : > { %508 = vst.msk [vmem:[#allocation2 + $0xf8] sm:$0xff] %vm395_vm0, %v459_v8 }
  0xba   : > { %541 = vst.msk [vmem:[#allocation2 + $0xf8] sm:$0xff] %vm525_vm2, %v394_v4 }
  0xbd   : > { %v3181_v10 = vpop.permute.xlu2 %636  ;;  %v3183_v11 = vpop.permute.xlu1 %591 }
  0xbe   : > { %4494 = vst [vmem:[#allocation11_spill] sm:$0xff] %v3181_v10  ;;  %v704_v13 = vpop.permute.xlu0 %703 }
  0xbf   : > { %4495 = vst [vmem:[#allocation12_spill] sm:$0xff] %v3183_v11  ;;  %v766_v14 = vmul.f32 %v704_v13, %v3185_v12  ;;  %v767_v15 = vmul.f32 %v704_v13, %v3179_v9 }
  0xc1   : > { %832 = vrot.lane.b32.xlu0 %v767_v15, %s2818_s16  ;;  %830 = vrot.lane.b32.xlu2 %v766_v14, %s2818_s16 }
  0xc5   : > { %v3191_v16 = vpop.permute.xlu2 %651  ;;  %v3193_v19 = vpop.permute.xlu1 %601 }
  0xc6   : > { %4496 = vst [vmem:[#allocation13_spill] sm:$0xff] %v3191_v16  ;;  %v724_v51 = vpop.permute.xlu0 %723 }
  0xc7   : > { %4497 = vst [vmem:[#allocation14_spill] sm:$0xff] %v3193_v19  ;;  %v776_v58 = vmul.f32 %v724_v51, %v3229_v57  ;;  %v777_v4 = vmul.f32 %v724_v51, %v3237_v62  ;;  %v3265_v51 = vld [vmem:[#allocation2 + $0x90] sm:$0xff] }
  0xcd   : > { %v3195_v24 = vpop.permute.xlu1 %616 }
  0xce   : > { %4498 = vst [vmem:[#allocation15_spill] sm:$0xff] %v3195_v24  ;;  %v712_v27 = vpop.permute.xlu2 %711  ;;  %v736_v14 = vpop.permute.xlu0 %735 }
  0xcf   : > { %v770_v33 = vmul.f32 %v712_v27, %v3197_v30  ;;  %v771_v45 = vmul.f32 %v712_v27, %v3213_v43  ;;  %v3249_v27 = vld [vmem:[#allocation2 + $0x78] sm:$0xff] }
  0xd1   : > { %838 = vrot.lane.b32.xlu0 %v770_v33, %s2818_s16  ;;  %v3251_v33 = vld [vmem:[#allocation2 + $0x80] sm:$0xff] }
  0xd5   : > { %v3201_v34 = vpop.permute.xlu1 %631 }
  0xd6   : > { %4499 = vst [vmem:[#allocation16_spill] sm:$0xff] %v3201_v34  ;;  %v720_v53 = vpop.permute.xlu2 %719  ;;  %v3313_v34 = vld [vmem:[#allocation2 + $0xf0] sm:$0xff] }
  0xd7   : > { %v774_v60 = vmul.f32 %v720_v53, %v3227_v55  ;;  %v775_v61 = vmul.f32 %v720_v53, %v3225_v54 }
  0xdd   : > { %v3203_v36 = vpop.permute.xlu1 %646 }
  0xde   : > { %4500 = vst [vmem:[#allocation17_spill] sm:$0xff] %v3203_v36  ;;  %v732_v15 = vpop.permute.xlu2 %731 }
  0xe6   : > { %v708_v39 = vpop.permute.xlu1 %707 }
  0xe7   : > { %v768_v40 = vmul.f32 %v708_v39, %v3207_v38  ;;  %v769_v41 = vmul.f32 %v708_v39, %v3205_v37  ;;  %v3253_v39 = vld [vmem:[#allocation2 + $0x70] sm:$0xff] }
  0xe9   : > { %834 = vrot.lane.b32.xlu1 %v768_v40, %s2818_s16  ;;  %836 = vrot.lane.b32.xlu2 %v769_v41, %s2818_s16  ;;  %v782_v40 = vmul.f32 %v736_v14, %v3251_v33  ;;  %v780_v41 = vmul.f32 %v732_v15, %v3253_v39 }
  0xee   : > { %v716_v47 = vpop.permute.xlu1 %715 }
  0xef   : > { %v772_v49 = vmul.f32 %v716_v47, %v3218_v46  ;;  %v773_v50 = vmul.f32 %v716_v47, %v3215_v44  ;;  %v3261_v47 = vld [vmem:[#allocation2 + $0x88] sm:$0xff] }
  0xf0   : > { %v783_v53 = vmul.f32 %v736_v14, %v3261_v47 }
  0xf1   : > { %840 = vrot.lane.b32.xlu1 %v771_v45, %s2818_s16  ;;  %844 = vrot.lane.b32.xlu0 %v773_v50, %s2818_s16  ;;  %v781_v45 = vmul.f32 %v732_v15, %v3249_v27  ;;  %v3263_v50 = vld [vmem:[#allocation2 + $0x98] sm:$0xff]  ;;  %v2819_v15 = vmov 2  }
  0xf2   : > { %842 = vrot.lane.b32.xlu2 %v772_v49, %s2818_s16  ;;  %2687 = vset.pattern.permute.xlu1 %v2819_v15 }
  0xf3   : > { %2688 = vset.pattern.permute.xlu2 %v2819_v15  ;;  %2689 = vset.pattern.permute.xlu0 %v2819_v15 }
  0xf6   : > { %v728_v63 = vpop.permute.xlu1 %727 }
  0xf7   : > { %v779_v8 = vmul.f32 %v728_v63, %v3239_v1  ;;  %v778_v13 = vmul.f32 %v728_v63, %v3241_v2  ;;  %v744_v63 = vpop.permute.xlu2 %743 }
  0xf9   : > { %846 = vrot.lane.b32.xlu1 %v774_v60, %s2818_s16  ;;  %850 = vrot.lane.b32.xlu0 %v776_v58, %s2818_s16 }
  0xfa   : > { %848 = vrot.lane.b32.xlu2 %v775_v61, %s2818_s16  ;;  %v748_v61 = vpop.permute.xlu0 %747 }
  0xfe   : > { %v740_v49 = vpop.permute.xlu1 %739 }
  0xff   : > { %v785_v58 = vmul.f32 %v740_v49, %v3263_v50  ;;  %v784_v60 = vmul.f32 %v740_v49, %v3265_v51 }
 0x101   : > { %852 = vrot.lane.b32.xlu1 %v777_v4, %s2818_s16  ;;  %856 = vrot.lane.b32.xlu0 %v779_v8, %s2818_s16  ;;  %v3273_v4 = vld [vmem:[#allocation2 + $0xa8] sm:$0xff]  ;;  %v3275_v8 = vld [vmem:[#allocation2 + $0xb0] sm:$0xff] }
 0x102   : > { %854 = vrot.lane.b32.xlu2 %v778_v13, %s2818_s16  ;;  %v3277_v13 = vld [vmem:[#allocation2 + $0xa0] sm:$0xff]  ;;  %v788_v14 = vmul.f32 %v748_v61, %v3275_v8 }
 0x106   : > { %v752_v49 = vpop.permute.xlu1 %751 }
 0x109   : > { %858 = vrot.lane.b32.xlu1 %v780_v41, %s2818_s16  ;;  %862 = vrot.lane.b32.xlu0 %v782_v40, %s2818_s16  ;;  %v786_v40 = vmul.f32 %v744_v63, %v3277_v13  ;;  %v787_v41 = vmul.f32 %v744_v63, %v3273_v4  ;;  %v760_v63 = vpop.permute.xlu0 %759 }
 0x10a   : > { %860 = vrot.lane.b32.xlu2 %v781_v45, %s2818_s16  ;;  %v3285_v45 = vld [vmem:[#allocation2 + $0xb8] sm:$0xff] }
 0x111   : > { %864 = vrot.lane.b32.xlu1 %v783_v53, %s2818_s16  ;;  %868 = vrot.lane.b32.xlu0 %v785_v58, %s2818_s16  ;;  %v3287_v53 = vld [vmem:[#allocation2 + $0xc8] sm:$0xff]  ;;  %v3289_v58 = vld [vmem:[#allocation2 + $0xc0] sm:$0xff] }
 0x112   : > { %866 = vrot.lane.b32.xlu2 %v784_v60, %s2818_s16  ;;  %v789_v60 = vmul.f32 %v748_v61, %v3285_v45  ;;  %v791_v7 = vmul.f32 %v752_v49, %v3287_v53  ;;  %v790_v15 = vmul.f32 %v752_v49, %v3289_v58 }
 0x119   : > { %870 = vrot.lane.b32.xlu1 %v786_v40, %s2818_s16  ;;  %874 = vrot.lane.b32.xlu0 %v788_v14, %s2818_s16  ;;  %v756_v14 = vpop.permute.xlu2 %755  ;;  %v3297_v40 = vld [vmem:[#allocation2 + $0xd8] sm:$0xff] }
 0x11a   : > { %872 = vrot.lane.b32.xlu2 %v787_v41, %s2818_s16  ;;  %v3299_v41 = vld [vmem:[#allocation2 + $0xe0] sm:$0xff]  ;;  %v792_v5 = vmul.f32 %v756_v14, %v3301_v3  ;;  %v793_v49 = vmul.f32 %v756_v14, %v3297_v40 }
 0x11b   : > { %v794_v61 = vmul.f32 %v760_v63, %v3299_v41 }
 0x121   : > { %876 = vrot.lane.b32.xlu1 %v789_v60, %s2818_s16  ;;  %880 = vrot.lane.b32.xlu0 %v791_v7, %s2818_s16  ;;  %v3309_v7 = vld [vmem:[#allocation2 + $0xe8] sm:$0xff]  ;;  %v764_v60 = vpop.permute.xlu1 %763 }
 0x122   : > { %878 = vrot.lane.b32.xlu2 %v790_v15, %s2818_s16  ;;  %v3311_v15 = vld [vmem:[#allocation2 + $0xf8] sm:$0xff]  ;;  %v795_v6 = vmul.f32 %v760_v63, %v3309_v7  ;;  %v796_v10 = vmul.f32 %v764_v60, %v3313_v34 }
 0x123   : > { %v797_v19 = vmul.f32 %v764_v60, %v3311_v15 }
 0x129   : > { %882 = vrot.lane.b32.xlu1 %v792_v5, %s2818_s16  ;;  %886 = vrot.lane.b32.xlu0 %v794_v61, %s2818_s16  ;;  %v3324_v5 = vpop.permute.xlu2 %830 }
 0x12a   : > { %884 = vrot.lane.b32.xlu2 %v793_v49, %s2818_s16  ;;  %4501 = vst [vmem:[#allocation18_spill] sm:$0xff] %v3324_v5 }
 0x131   : > { %888 = vrot.lane.b32.xlu1 %v795_v6, %s2818_s16  ;;  %892 = vrot.lane.b32.xlu0 %v797_v19, %s2818_s16 }
 0x132   : > { %890 = vrot.lane.b32.xlu2 %v796_v10, %s2818_s16  ;;  %s2401_s16 = sshll.u32 %s4381_s26, 4  ;;  %s2402_s16 = int_to_ptr.vmem [resolvable:$true] %s2401_s16 }
 0x133   : > { %v3339_v10 = vpop.permute.xlu0 %832 }
 0x134   : > { %4504 = vst [vmem:[#allocation21_spill] sm:$0xff] %v3339_v10 }
 0x139   : > { %944 = vperm.xlu1 %2687, %v2978_v18   ;;  %952 = vperm.xlu0 %2689, %v3069_v35  }
 0x13a   : > { %948 = vperm.xlu2 %2688, %v2973_v17  }
 0x141   : > { %956 = vperm.xlu1 %2687, %v2992_v21   ;;  %972 = vperm.xlu0 %2689, %v3094_v42  }
 0x142   : > { %960 = vperm.xlu2 %2688, %v2987_v20  }
 0x143   : > { %v3329_v63 = vpop.permute.xlu2 %836  ;;  %v3345_v14 = vpop.permute.xlu0 %838 }
 0x144   : > { %4502 = vst [vmem:[#allocation19_spill] sm:$0xff] %v3329_v63 }
 0x149   : > { %964 = vperm.xlu1 %2687, %v3005_v23   ;;  %984 = vperm.xlu0 %2689, %v3109_v48  }
 0x14a   : > { %968 = vperm.xlu2 %2688, %v3000_v22  }
 0x14c   : > { %v3334_v6 = vpop.permute.xlu2 %842 }
 0x14d   : > { %4503 = vst [vmem:[#allocation20_spill] sm:$0xff] %v3334_v6 }
 0x151   : > { %976 = vperm.xlu1 %2687, %v3027_v26   ;;  %996 = vperm.xlu0 %2689, %v3123_v52  }
 0x152   : > { %980 = vperm.xlu2 %2688, %v3022_v25  }
 0x154   : > { %v3341_v19 = vpop.permute.xlu2 %848 }
 0x155   : > { %4505 = vst [vmem:[#allocation22_spill] sm:$0xff] %v3341_v19 }
 0x159   : > { %988 = vperm.xlu1 %2687, %v3042_v29  }
 0x15a   : > { %992 = vperm.xlu2 %2688, %v3037_v28  }
 0x15b   : > { %v3347_v61 = vpop.permute.xlu1 %834 }
 0x15c   : > { %4506 = vst [vmem:[#allocation23_spill] sm:$0xff] %v3347_v61  ;;  %v3349_v49 = vpop.permute.xlu2 %854 }
 0x15d   : > { %4507 = vst [vmem:[#allocation24_spill] sm:$0xff] %v3349_v49 }
 0x161   : > { %1000 = vperm.xlu1 %2687, %v3057_v32  }
 0x162   : > { %1004 = vperm.xlu2 %2688, %v3052_v31  }
 0x163   : > { %v3353_v60 = vpop.permute.xlu1 %840  ;;  %v3355_v5 = vpop.permute.xlu0 %844 }
 0x164   : > { %4508 = vst [vmem:[#allocation25_spill] sm:$0xff] %v3355_v5  ;;  %v3357_v10 = vpop.permute.xlu2 %860 }
 0x16b   : > { %v3359_v36 = vpop.permute.xlu1 %846  ;;  %v3361_v0 = vpop.permute.xlu0 %850 }
 0x16c   : > { %4509 = vst [vmem:[#allocation26_spill] sm:$0xff] %v3359_v36  ;;  %v3363_v16 = vpop.permute.xlu2 %866 }
 0x16d   : > { %4510 = vst [vmem:[#allocation27_spill] sm:$0xff] %v3361_v0 }
 0x16e   : > { %4511 = vst [vmem:[#allocation28_spill] sm:$0xff] %v3363_v16 }
 0x173   : > { %v3365_v24 = vpop.permute.xlu1 %852  ;;  %v3367_v11 = vpop.permute.xlu0 %856 }
 0x174   : > { %4512 = vst [vmem:[#allocation29_spill] sm:$0xff] %v3365_v24  ;;  %v3369_v49 = vpop.permute.xlu2 %872 }
 0x175   : > { %4513 = vst [vmem:[#allocation30_spill] sm:$0xff] %v3367_v11 }
 0x176   : > { %4514 = vst [vmem:[#allocation31_spill] sm:$0xff] %v3369_v49 }
 0x17b   : > { %v3371_v6 = vpop.permute.xlu1 %858  ;;  %v3373_v56 = vpop.permute.xlu0 %862 }
 0x17c   : > { %4515 = vst [vmem:[#allocation32_spill] sm:$0xff] %v3371_v6  ;;  %v3375_v61 = vpop.permute.xlu2 %878 }
 0x17d   : > { %4516 = vst [vmem:[#allocation33_spill] sm:$0xff] %v3373_v56 }
 0x17e   : > { %4517 = vst [vmem:[#allocation34_spill] sm:$0xff] %v3375_v61 }
 0x183   : > { %v3377_v5 = vpop.permute.xlu1 %864  ;;  %v3379_v63 = vpop.permute.xlu0 %868 }
 0x184   : > { %4518 = vst [vmem:[#allocation35_spill] sm:$0xff] %v3377_v5  ;;  %v3381_v59 = vpop.permute.xlu2 %884 }
 0x185   : > { %4519 = vst [vmem:[#allocation36_spill] sm:$0xff] %v3379_v63 }
 0x18b   : > { %v3383_v0 = vpop.permute.xlu1 %870  ;;  %v3385_v16 = vpop.permute.xlu0 %874 }
 0x18c   : > { %4520 = vst [vmem:[#allocation37_spill] sm:$0xff] %v3383_v0  ;;  %v3387_v24 = vpop.permute.xlu2 %890 }
 0x18d   : > { %4521 = vst [vmem:[#allocation38_spill] sm:$0xff] %v3385_v16 }
 0x18e   : > { %4522 = vst [vmem:[#allocation39_spill] sm:$0xff] %v3387_v24 }
 0x193   : > { %v3389_v11 = vpop.permute.xlu1 %876  ;;  %v3391_v36 = vpop.permute.xlu0 %880 }
 0x194   : > { %4523 = vst [vmem:[#allocation40_spill] sm:$0xff] %v3389_v11  ;;  %v949_v19 = vpop.permute.xlu2 %948 }
 0x195   : > { %4524 = vst [vmem:[#allocation41_spill] sm:$0xff] %v3391_v36  ;;  %v1009_v56 = vmul.f32 %v949_v19, %v3207_v38 }
 0x197   : > { %1075 = vrot.lane.b32.xlu2 %v1009_v56, %s2820_s21  ;;  %v1010_v56 = vmul.f32 %v949_v19, %v3205_v37 }
 0x19b   : > { %v3395_v61 = vpop.permute.xlu1 %882  ;;  %v3397_v63 = vpop.permute.xlu0 %886 }
 0x19c   : > { %4525 = vst [vmem:[#allocation42_spill] sm:$0xff] %v3397_v63  ;;  %v961_v63 = vpop.permute.xlu2 %960 }
 0x19d   : > { %v1015_v6 = vmul.f32 %v961_v63, %v3227_v55  ;;  %v1016_v19 = vmul.f32 %v961_v63, %v3225_v54 }
 0x1a3   : > { %v3399_v5 = vpop.permute.xlu1 %888  ;;  %v3401_v0 = vpop.permute.xlu0 %892 }
 0x1a4   : > { %4526 = vst [vmem:[#allocation43_spill] sm:$0xff] %v3399_v5 }
 0x1a5   : > { %4527 = vst [vmem:[#allocation44_spill] sm:$0xff] %v3401_v0 }
 0x1ab   : > { %v945_v16 = vpop.permute.xlu1 %944  ;;  %v953_v24 = vpop.permute.xlu0 %952 }
 0x1ac   : > { %v1007_v11 = vmul.f32 %v945_v16, %v3185_v12  ;;  %v1008_v36 = vmul.f32 %v945_v16, %v3179_v9  ;;  %v1012_v49 = vmul.f32 %v953_v24, %v3213_v43  ;;  %v1011_v0 = vmul.f32 %v953_v24, %v3197_v30 }
 0x1ae   : > { %1073 = vrot.lane.b32.xlu1 %v1008_v36, %s2820_s21  ;;  %1071 = vrot.lane.b32.xlu0 %v1007_v11, %s2820_s21 }
 0x1af   : > { %1081 = vrot.lane.b32.xlu2 %v1012_v49, %s2820_s21 }
 0x1b3   : > { %v957_v5 = vpop.permute.xlu1 %956  ;;  %v973_v24 = vpop.permute.xlu0 %972 }
 0x1b4   : > { %v1013_v36 = vmul.f32 %v957_v5, %v3218_v46  ;;  %v1014_v11 = vmul.f32 %v957_v5, %v3215_v44  ;;  %v969_v5 = vpop.permute.xlu2 %968 }
 0x1b6   : > { %1077 = vrot.lane.b32.xlu0 %v1010_v56, %s2820_s21  ;;  %1079 = vrot.lane.b32.xlu1 %v1011_v0, %s2820_s21 }
 0x1b7   : > { %1087 = vrot.lane.b32.xlu2 %v1015_v6, %s2820_s21  ;;  %v1021_v6 = vmul.f32 %v973_v24, %v3253_v39 }
 0x1bb   : > { %v965_v16 = vpop.permute.xlu1 %964  ;;  %v985_v63 = vpop.permute.xlu0 %984 }
 0x1bc   : > { %v1018_v49 = vmul.f32 %v965_v16, %v3237_v62  ;;  %v1017_v0 = vmul.f32 %v965_v16, %v3229_v57  ;;  %v2821_v16 = vmov 3  }
 0x1bd   : > { %2690 = vset.pattern.permute.xlu2 %v2821_v16  ;;  %2692 = vset.pattern.permute.xlu1 %v2821_v16 }
 0x1be   : > { %1083 = vrot.lane.b32.xlu0 %v1013_v36, %s2820_s21  ;;  %1085 = vrot.lane.b32.xlu1 %v1014_v11, %s2820_s21  ;;  %v1019_v36 = vmul.f32 %v969_v5, %v3241_v2  ;;  %v1020_v11 = vmul.f32 %v969_v5, %v3239_v1  ;;  %v981_v5 = vpop.permute.xlu2 %980 }
 0x1bf   : > { %1093 = vrot.lane.b32.xlu2 %v1018_v49, %s2820_s21  ;;  %2691 = vset.pattern.permute.xlu0 %v2821_v16 }
 0x1c3   : > { %v977_v56 = vpop.permute.xlu1 %976 }
 0x1c4   : > { %v1024_v49 = vmul.f32 %v977_v56, %v3261_v47 }
 0x1c6   : > { %1089 = vrot.lane.b32.xlu0 %v1016_v19, %s2820_s21  ;;  %1091 = vrot.lane.b32.xlu1 %v1017_v0, %s2820_s21  ;;  %v1022_v19 = vmul.f32 %v973_v24, %v3249_v27  ;;  %v1023_v0 = vmul.f32 %v977_v56, %v3251_v33  ;;  %v997_v24 = vpop.permute.xlu0 %996  ;;  %v1028_v56 = vmul.f32 %v985_v63, %v3273_v4 }
 0x1c7   : > { %1099 = vrot.lane.b32.xlu2 %v1021_v6, %s2820_s21  ;;  %v1027_v6 = vmul.f32 %v985_v63, %v3277_v13  ;;  %v1034_v63 = vmul.f32 %v997_v24, %v3297_v40 }
 0x1ce   : > { %1095 = vrot.lane.b32.xlu0 %v1019_v36, %s2820_s21  ;;  %1097 = vrot.lane.b32.xlu1 %v1020_v11, %s2820_s21  ;;  %v989_v36 = vpop.permute.xlu1 %988  ;;  %v1025_v11 = vmul.f32 %v981_v5, %v3265_v51 }
 0x1cf   : > { %1105 = vrot.lane.b32.xlu2 %v1024_v49, %s2820_s21  ;;  %v1026_v49 = vmul.f32 %v981_v5, %v3263_v50  ;;  %v1030_v16 = vmul.f32 %v989_v36, %v3285_v45 }
 0x1d6   : > { %1103 = vrot.lane.b32.xlu1 %v1023_v0, %s2820_s21  ;;  %1101 = vrot.lane.b32.xlu0 %v1022_v19, %s2820_s21  ;;  %v1029_v19 = vmul.f32 %v989_v36, %v3275_v8  ;;  %v1033_v0 = vmul.f32 %v997_v24, %v3301_v3  ;;  %v1001_v5 = vpop.permute.xlu1 %1000 }
 0x1d7   : > { %1111 = vrot.lane.b32.xlu2 %v1027_v6, %s2820_s21  ;;  %v993_v6 = vpop.permute.xlu2 %992  ;;  %v1035_v36 = vmul.f32 %v1001_v5, %v3299_v41 }
 0x1de   : > { %1109 = vrot.lane.b32.xlu1 %v1026_v49, %s2820_s21  ;;  %1107 = vrot.lane.b32.xlu0 %v1025_v11, %s2820_s21  ;;  %v1031_v49 = vmul.f32 %v993_v6, %v3289_v58  ;;  %v1032_v11 = vmul.f32 %v993_v6, %v3287_v53 }
 0x1df   : > { %1117 = vrot.lane.b32.xlu2 %v1030_v16, %s2820_s21  ;;  %v1036_v16 = vmul.f32 %v1001_v5, %v3309_v7 }
 0x1e6   : > { %1115 = vrot.lane.b32.xlu1 %v1029_v19, %s2820_s21  ;;  %1113 = vrot.lane.b32.xlu0 %v1028_v56, %s2820_s21  ;;  %v1005_v56 = vpop.permute.xlu2 %1004 }
 0x1e7   : > { %1123 = vrot.lane.b32.xlu2 %v1033_v0, %s2820_s21  ;;  %v1037_v19 = vmul.f32 %v1005_v56, %v3313_v34  ;;  %v1038_v0 = vmul.f32 %v1005_v56, %v3311_v15 }
 0x1ee   : > { %1121 = vrot.lane.b32.xlu1 %v1032_v11, %s2820_s21  ;;  %1119 = vrot.lane.b32.xlu0 %v1031_v49, %s2820_s21 }
 0x1ef   : > { %1129 = vrot.lane.b32.xlu2 %v1036_v16, %s2820_s21 }
 0x1f1   : > { %v3467_v24 = vpop.permute.xlu2 %1075 }
 0x1f6   : > { %1127 = vrot.lane.b32.xlu1 %v1035_v36, %s2820_s21  ;;  %1125 = vrot.lane.b32.xlu0 %v1034_v63, %s2820_s21 }
 0x1f7   : > { %1185 = vperm.xlu2 %2690, %v2978_v18  }
 0x1fe   : > { %1133 = vrot.lane.b32.xlu1 %v1038_v0, %s2820_s21  ;;  %1131 = vrot.lane.b32.xlu0 %v1037_v19, %s2820_s21  ;;  %s2388_s21 = scalar_lea.sflag [#allocation4], %s343_s22 }
 0x1ff   : > { %1197 = vperm.xlu2 %2690, %v2992_v21  }
 0x206   : > { %1193 = vperm.xlu1 %2692, %v3069_v35   ;;  %1189 = vperm.xlu0 %2691, %v2973_v17  }
 0x207   : > { %1205 = vperm.xlu2 %2690, %v3005_v23   ;;  %v4531_v23 = vmov 0  }
 0x209   : > { %v3472_v18 = vpop.permute.xlu2 %1081 }
 0x20e   : > { %1201 = vperm.xlu1 %2692, %v2987_v20   ;;  %1209 = vperm.xlu0 %2691, %v3000_v22  }
 0x20f   : > { %1217 = vperm.xlu2 %2690, %v3027_v26  }
 0x211   : > { %v3477_v6 = vpop.permute.xlu2 %1087 }
 0x216   : > { %1213 = vperm.xlu1 %2692, %v3094_v42   ;;  %1221 = vperm.xlu0 %2691, %v3022_v25  }
 0x217   : > { %1229 = vperm.xlu2 %2690, %v3042_v29  }
 0x219   : > { %v3482_v21 = vpop.permute.xlu2 %1093 }
 0x21a   : > { %4528 = vst [vmem:[#allocation45_spill] sm:$0xff] %v3482_v21 }
 0x21e   : > { %1225 = vperm.xlu1 %2692, %v3109_v48   ;;  %1233 = vperm.xlu0 %2691, %v3037_v28  }
 0x21f   : > { %1241 = vperm.xlu2 %2690, %v3057_v32  }
 0x220   : > { %v3487_v17 = vpop.permute.xlu1 %1073  ;;  %v3489_v20 = vpop.permute.xlu0 %1071 }
 0x221   : > { %4529 = vst [vmem:[#allocation46_spill] sm:$0xff] %v3487_v17  ;;  %v3491_v22 = vpop.permute.xlu2 %1099 }
 0x222   : > { %4530 = vst [vmem:[#allocation47_spill] sm:$0xff] %v3489_v20 }
 0x226   : > { %1237 = vperm.xlu1 %2692, %v3123_v52   ;;  %1245 = vperm.xlu0 %2691, %v3052_v31  }
 0x227   : > { %2695 = vset.pattern.permute.xlu2 %v4531_v23 }
 0x228   : > { %v3496_v25 = vpop.permute.xlu1 %1079  ;;  %v3498_v26 = vpop.permute.xlu0 %1077 }
 0x229   : > { %v3500_v29 = vpop.permute.xlu2 %1105 }
 0x22e   : > { %2693 = vset.pattern.permute.xlu0 %v4531_v23  ;;  %2694 = vset.pattern.permute.xlu1 %v4531_v23 }
 0x22f   : > { %586 = vperm.xlu0 %2693, %v3069_v35  }
 0x230   : > { %v3505_v28 = vpop.permute.xlu1 %1085  ;;  %v3507_v32 = vpop.permute.xlu0 %1083 }
 0x231   : > { %v3509_v5 = vpop.permute.xlu2 %1111 }
 0x237   : > { %611 = vperm.xlu0 %2693, %v3094_v42  }
 0x238   : > { %v3512_v31 = vpop.permute.xlu1 %1091  ;;  %v3514_v49 = vpop.permute.xlu0 %1089 }
 0x239   : > { %4532 = vst [vmem:[#allocation48_spill] sm:$0xff] %v3512_v31  ;;  %v3516_v11 = vpop.permute.xlu2 %1117 }
 0x23a   : > { %4533 = vst [vmem:[#allocation49_spill] sm:$0xff] %v3516_v11 }
 0x23f   : > { %626 = vperm.xlu0 %2693, %v3109_v48  }
 0x240   : > { %v3519_v16 = vpop.permute.xlu1 %1097  ;;  %v3521_v63 = vpop.permute.xlu0 %1095 }
 0x241   : > { %4534 = vst [vmem:[#allocation50_spill] sm:$0xff] %v3519_v16  ;;  %v3523_v35 = vpop.permute.xlu2 %1123 }
 0x242   : > { %4535 = vst [vmem:[#allocation51_spill] sm:$0xff] %v3521_v63 }
 0x247   : > { %641 = vperm.xlu0 %2693, %v3123_v52  }
 0x248   : > { %v3526_v36 = vpop.permute.xlu1 %1103  ;;  %v3528_v56 = vpop.permute.xlu0 %1101 }
 0x249   : > { %v3530_v42 = vpop.permute.xlu2 %1129 }
 0x24a   : > { %4536 = vst [vmem:[#allocation52_spill] sm:$0xff] %v3530_v42 }
 0x250   : > { %v3532_v19 = vpop.permute.xlu1 %1109  ;;  %v3534_v0 = vpop.permute.xlu0 %1107 }
 0x251   : > { %4537 = vst [vmem:[#allocation53_spill] sm:$0xff] %v3532_v19  ;;  %v1186_v11 = vpop.permute.xlu2 %1185 }
 0x252   : > { %4538 = vst [vmem:[#allocation54_spill] sm:$0xff] %v3534_v0  ;;  %v1248_v48 = vmul.f32 %v1186_v11, %v3185_v12  ;;  %v1249_v20 = vmul.f32 %v1186_v11, %v3179_v9 }
 0x254   : > { %1312 = vrot.lane.b32.xlu1 %v1248_v48, %s2822_s19  ;;  %1314 = vrot.lane.b32.xlu2 %v1249_v20, %s2822_s19 }
 0x258   : > { %v3540_v52 = vpop.permute.xlu1 %1115  ;;  %v3542_v17 = vpop.permute.xlu0 %1113 }
 0x259   : > { %4539 = vst [vmem:[#allocation55_spill] sm:$0xff] %v3540_v52 }
 0x260   : > { %v3544_v31 = vpop.permute.xlu1 %1121  ;;  %v3546_v21 = vpop.permute.xlu0 %1119 }
 0x261   : > { %4540 = vst [vmem:[#allocation56_spill] sm:$0xff] %v3544_v31 }
 0x262   : > { %4541 = vst [vmem:[#allocation57_spill] sm:$0xff] %v3546_v21  ;;  %v1198_v21 = vpop.permute.xlu2 %1197 }
 0x263   : > { %v1254_v63 = vmul.f32 %v1198_v21, %v3218_v46  ;;  %v1255_v16 = vmul.f32 %v1198_v21, %v3215_v44 }
 0x268   : > { %v3548_v19 = vpop.permute.xlu1 %1127  ;;  %v3550_v0 = vpop.permute.xlu0 %1125 }
 0x269   : > { %4542 = vst [vmem:[#allocation58_spill] sm:$0xff] %v3548_v19 }
 0x270   : > { %v3552_v12 = vpop.permute.xlu1 %1133  ;;  %v3554_v9 = vpop.permute.xlu0 %1131 }
 0x278   : > { %v1194_v11 = vpop.permute.xlu1 %1193  ;;  %v1190_v48 = vpop.permute.xlu0 %1189 }
 0x279   : > { %v1252_v20 = vmul.f32 %v1194_v11, %v3197_v30  ;;  %v1250_v52 = vmul.f32 %v1190_v48, %v3207_v38  ;;  %v1251_v42 = vmul.f32 %v1190_v48, %v3205_v37  ;;  %v1253_v31 = vmul.f32 %v1194_v11, %v3213_v43  ;;  %v1206_v37 = vpop.permute.xlu2 %1205 }
 0x27b   : > { %1320 = vrot.lane.b32.xlu2 %v1252_v20, %s2822_s19  ;;  %1318 = vrot.lane.b32.xlu1 %v1251_v42, %s2822_s19  ;;  %v1258_v42 = vmul.f32 %v1206_v37, %v3229_v57 }
 0x27c   : > { %1316 = vrot.lane.b32.xlu0 %v1250_v52, %s2822_s19 }
 0x280   : > { %v1210_v19 = vpop.permute.xlu0 %1209  ;;  %v1202_v38 = vpop.permute.xlu1 %1201 }
 0x281   : > { %v1257_v52 = vmul.f32 %v1202_v38, %v3225_v54  ;;  %v1256_v43 = vmul.f32 %v1202_v38, %v3227_v55  ;;  %v1260_v46 = vmul.f32 %v1210_v19, %v3241_v2  ;;  %v1261_v21 = vmul.f32 %v1210_v19, %v3239_v1  ;;  %v1218_v54 = vpop.permute.xlu2 %1217 }
 0x282   : > { %v1265_v19 = vmul.f32 %v1218_v54, %v3261_v47 }
 0x283   : > { %1326 = vrot.lane.b32.xlu2 %v1255_v16, %s2822_s19  ;;  %1324 = vrot.lane.b32.xlu1 %v1254_v63, %s2822_s19  ;;  %v1264_v63 = vmul.f32 %v1218_v54, %v3251_v33 }
 0x284   : > { %1322 = vrot.lane.b32.xlu0 %v1253_v31, %s2822_s19  ;;  %v1259_v31 = vmul.f32 %v1206_v37, %v3237_v62 }
 0x288   : > { %v1222_v48 = vpop.permute.xlu0 %1221  ;;  %v1214_v57 = vpop.permute.xlu1 %1213 }
 0x289   : > { %v1263_v11 = vmul.f32 %v1214_v57, %v3249_v27  ;;  %v1262_v20 = vmul.f32 %v1214_v57, %v3253_v39  ;;  %v1266_v62 = vmul.f32 %v1222_v48, %v3265_v51  ;;  %v1267_v1 = vmul.f32 %v1222_v48, %v3263_v50  ;;  %v1230_v27 = vpop.permute.xlu2 %1229 }
 0x28a   : > { %v1270_v38 = vmul.f32 %v1230_v27, %v3275_v8  ;;  %v1271_v8 = vmul.f32 %v1230_v27, %v3285_v45  ;;  %v908_v45 = vsel %vm894_vm3, %v3395_v61, %v3381_v59  ;;  %v1433_v27 = vld [vmem:[%s4470_s3 + $0x40] sm:$0xff] }
 0x28b   : > { %1332 = vrot.lane.b32.xlu2 %v1258_v42, %s2822_s19  ;;  %1330 = vrot.lane.b32.xlu1 %v1257_v52, %s2822_s19 }
 0x28c   : > { %1328 = vrot.lane.b32.xlu0 %v1256_v43, %s2822_s19 }
 0x290   : > { %v1234_v44 = vpop.permute.xlu0 %1233  ;;  %v1226_v37 = vpop.permute.xlu1 %1225 }
 0x291   : > { %v1269_v42 = vmul.f32 %v1226_v37, %v3273_v4  ;;  %v1268_v50 = vmul.f32 %v1226_v37, %v3277_v13  ;;  %v1272_v47 = vmul.f32 %v1234_v44, %v3289_v58  ;;  %v1273_v51 = vmul.f32 %v1234_v44, %v3287_v53  ;;  %v1242_v4 = vpop.permute.xlu2 %1241 }
 0x292   : > { %v1277_v59 = vmul.f32 %v1242_v4, %v3309_v7  ;;  %v3642_v7 = vld [vmem:[%s4470_s3 + $0x8] sm:$0xff] }
 0x293   : > { %1338 = vrot.lane.b32.xlu2 %v1261_v21, %s2822_s19  ;;  %1336 = vrot.lane.b32.xlu1 %v1260_v46, %s2822_s19  ;;  %v1276_v46 = vmul.f32 %v1242_v4, %v3299_v41  ;;  %v1440_v4 = vld [vmem:[%s4470_s3 + $0x78] sm:$0xff] }
 0x294   : > { %1334 = vrot.lane.b32.xlu0 %v1259_v31, %s2822_s19 }
 0x298   : > { %v1246_v16 = vpop.permute.xlu0 %1245  ;;  %v1238_v43 = vpop.permute.xlu1 %1237 }
 0x299   : > { %v1275_v21 = vmul.f32 %v1238_v43, %v3297_v40  ;;  %v1274_v53 = vmul.f32 %v1238_v43, %v3301_v3  ;;  %v1149_v40 = vsel %vm1135_vm4, %v3523_v35, %v3550_v0  ;;  %v1279_v57 = vmul.f32 %v1246_v16, %v3311_v15  ;;  %v3637_v35 = vld [vmem:[%s4470_s3 + $0x10] sm:$0xff]  ;;  %v3647_v15 = vld [vmem:[%s4470_s3] sm:$0xff] }
 0x29a   : > { %v3655_v0 = vld [vmem:[%s4470_s3 + $0x20] sm:$0xff] }
 0x29b   : > { %1344 = vrot.lane.b32.xlu2 %v1264_v63, %s2822_s19  ;;  %1342 = vrot.lane.b32.xlu1 %v1263_v11, %s2822_s19 }
 0x29c   : > { %1340 = vrot.lane.b32.xlu0 %v1262_v20, %s2822_s19  ;;  %v3665_v20 = vld [vmem:[%s4470_s3 + $0x28] sm:$0xff] }
 0x2a1   : > { %v3588_v2 = vpop.permute.xlu0 %586 }
 0x2a3   : > { %1350 = vrot.lane.b32.xlu2 %v1267_v1, %s2822_s19  ;;  %1348 = vrot.lane.b32.xlu1 %v1266_v62, %s2822_s19  ;;  %v1432_v1 = vld [vmem:[%s4470_s3 + $0x38] sm:$0xff] }
 0x2a4   : > { %1346 = vrot.lane.b32.xlu0 %v1265_v19, %s2822_s19  ;;  %v1431_v19 = vld [vmem:[%s4470_s3 + $0x30] sm:$0xff] }
 0x2a9   : > { %v3596_v52 = vpop.permute.xlu0 %611 }
 0x2ab   : > { %1356 = vrot.lane.b32.xlu2 %v1270_v38, %s2822_s19  ;;  %1354 = vrot.lane.b32.xlu1 %v1269_v42, %s2822_s19  ;;  %v1435_v38 = vld [vmem:[%s4470_s3 + $0x50] sm:$0xff]  ;;  %v1434_v42 = vld [vmem:[%s4470_s3 + $0x48] sm:$0xff] }
 0x2ac   : > { %1352 = vrot.lane.b32.xlu0 %v1268_v50, %s2822_s19  ;;  %v1436_v50 = vld [vmem:[%s4470_s3 + $0x58] sm:$0xff] }
 0x2ae   : > { %v1315_v61 = vpop.permute.xlu2 %1314 }
 0x2b1   : > { %v3604_v48 = vpop.permute.xlu0 %626 }
 0x2b3   : > { %1362 = vrot.lane.b32.xlu2 %v1273_v51, %s2822_s19  ;;  %1360 = vrot.lane.b32.xlu1 %v1272_v47, %s2822_s19  ;;  %v1439_v51 = vld [vmem:[%s4470_s3 + $0x70] sm:$0xff] }
 0x2b4   : > { %1358 = vrot.lane.b32.xlu0 %v1271_v8, %s2822_s19  ;;  %v1437_v8 = vld [vmem:[%s4470_s3 + $0x60] sm:$0xff] }
 0x2b9   : > { %v642_v31 = vpop.permute.xlu0 %641 }
 0x2ba   : > { %v667_v58 = vmul.f32 %v3301_v3, %v642_v31  ;;  %v1278_v3 = vmul.f32 %v1246_v16, %v3313_v34  ;;  %v3660_v16 = vld [vmem:[%s4470_s3 + $0x18] sm:$0xff] }
 0x2bb   : > { %1368 = vrot.lane.b32.xlu2 %v1276_v46, %s2822_s19  ;;  %1366 = vrot.lane.b32.xlu1 %v1275_v21, %s2822_s19  ;;  %v656_v21 = vmul.f32 %v3197_v30, %v3588_v2  ;;  %v1138_v30 = vsel %vm1135_vm4, %v3496_v25, %v3472_v18 }
 0x2bc   : > { %v940_v44 = vadd.f32 %v908_v45, %v667_v58  ;;  %1364 = vrot.lane.b32.xlu0 %v1274_v53, %s2822_s19  ;;  %v897_v58 = vsel %vm894_vm3, %v3345_v14, %v3353_v60  ;;  %v1438_v45 = vld [vmem:[%s4470_s3 + $0x68] sm:$0xff] }
 0x2be   : > { %v3623_v54 = vadd.f32 %v1149_v40, %v940_v44  ;;  %v929_v44 = vadd.f32 %v897_v58, %v656_v21  ;;  %v4543_v40 = vmov 1  }
 0x2c3   : > { %1374 = vrot.lane.b32.xlu2 %v1279_v57, %s2822_s19  ;;  %1372 = vrot.lane.b32.xlu1 %v1278_v3, %s2822_s19  ;;  %v1170_v57 = vadd.f32 %v1138_v30, %v929_v44  ;;  %v4546_v44 = vld [vmem:[#allocation37_spill] sm:$0xff] }
 0x2c4   : > { %1370 = vrot.lane.b32.xlu0 %v1277_v59, %s2822_s19  ;;  %s2749_s19 = sshra.s32 %s2404_s30, 4  ;;  %s2750_s19 = int_to_ptr.hbm [resolvable:$true] %s2749_s19 }
 0x2c5   : > { %p2756_p1 = scmp.lt.s32.totalorder %s2750_s19, %s4475_s8 }
 0x2c6   : > { %v1313_v63 = vpop.permute.xlu1 %1312 }
 0x2c7   : > { %v3632_v11 = vsel %vm1376_vm5, %v1313_v63, %v1315_v61 }
 0x2cb   : > { %1453 = vperm.xlu2 %2695, %v3637_v35   ;;  %1448 = vperm.xlu1 %2694, %v3642_v7  }
 0x2cc   : > { %1443 = vperm.xlu0 %2693, %v3647_v15  }
 0x2d3   : > { %1463 = vperm.xlu2 %2695, %v3655_v0   ;;  %1458 = vperm.xlu1 %2694, %v3660_v16  }
 0x2d4   : > { %1468 = vperm.xlu0 %2693, %v3665_v20  }
 0x2d5   : > { %v1321_v62 = vpop.permute.xlu2 %1320 }
 0x2db   : > { %1478 = vperm.xlu2 %2695, %v1432_v1   ;;  %1473 = vperm.xlu1 %2694, %v1431_v19  }
 0x2dc   : > { %1483 = vperm.xlu0 %2693, %v1433_v27  }
 0x2dd   : > { %v1327_v37 = vpop.permute.xlu2 %1326 }
 0x2e3   : > { %1493 = vperm.xlu2 %2695, %v1435_v38   ;;  %1488 = vperm.xlu1 %2694, %v1434_v42  }
 0x2e4   : > { %1498 = vperm.xlu0 %2693, %v1436_v50  }
 0x2e5   : > { %v1333_v47 = vpop.permute.xlu2 %1332 }
 0x2eb   : > { %1513 = vperm.xlu2 %2695, %v1439_v51   ;;  %1503 = vperm.xlu1 %2694, %v1437_v8  }
 0x2ec   : > { %1518 = vperm.xlu0 %2693, %v1440_v4  }
 0x2ed   : > { %v1319_v43 = vpop.permute.xlu1 %1318  ;;  %v1339_v46 = vpop.permute.xlu2 %1338 }
 0x2ee   : > { %v1317_v31 = vpop.permute.xlu0 %1316 }
 0x2ef   : > { %v3700_v53 = vsel %vm1376_vm5, %v1317_v31, %v1319_v43 }
 0x2f3   : > { %2697 = vset.pattern.permute.xlu2 %v4543_v40  ;;  %2696 = vset.pattern.permute.xlu1 %v4543_v40 }
 0x2f4   : > { %1508 = vperm.xlu0 %2693, %v1438_v45   ;;  %1614 = vperm.xlu2 %2697, %v1440_v4  }
 0x2f5   : > { %1610 = vperm.xlu1 %2696, %v1439_v51   ;;  %v1325_v2 = vpop.permute.xlu1 %1324  ;;  %v1345_v3 = vpop.permute.xlu2 %1344  ;;  %v661_v51 = vmul.f32 %v3253_v39, %v3596_v52 }
 0x2f6   : > { %v3714_v14 = vsel %vm1376_vm5, %v1325_v2, %v1327_v37  ;;  %v1323_v60 = vpop.permute.xlu0 %1322 }
 0x2f7   : > { %v1379_v59 = vsel %vm1376_vm5, %v1321_v62, %v1323_v60 }
 0x2f8   : > { %v1411_v61 = vadd.f32 %v1379_v59, %v1170_v57  ;;  %v4548_v57 = vld [vmem:[#allocation26_spill] sm:$0xff] }
 0x2fc   : > { %2698 = vset.pattern.permute.xlu0 %v4543_v40  ;;  %1606 = vperm.xlu2 %2697, %v1438_v45   ;;  %v4545_v45 = vld [vmem:[#allocation31_spill] sm:$0xff] }
 0x2fd   : > { %1594 = vperm.xlu0 %2698, %v1435_v38   ;;  %1602 = vperm.xlu1 %2696, %v1437_v8   ;;  %v1331_v63 = vpop.permute.xlu1 %1330  ;;  %v1351_v4 = vpop.permute.xlu2 %1350  ;;  %v4544_v8 = vld [vmem:[#allocation32_spill] sm:$0xff] }
 0x2fe   : > { %v1329_v43 = vpop.permute.xlu0 %1328  ;;  %v902_v31 = vsel %vm894_vm3, %v4544_v8, %v3357_v10 }
 0x2ff   : > { %v1381_v18 = vsel %vm1376_vm5, %v1329_v43, %v1331_v63  ;;  %v934_v58 = vadd.f32 %v902_v31, %v661_v51  ;;  %v1140_v51 = vsel %vm1135_vm4, %v3477_v6, %v3514_v49  ;;  %v2711_v6 = vld [vmem:[#allocation2 + $0x10] sm:$0xff]  ;;  %v4552_v49 = vld [vmem:[#allocation6_spill] sm:$0xff] }
 0x304   : > { %1586 = vperm.xlu2 %2697, %v1433_v27  }
 0x305   : > { %1582 = vperm.xlu0 %2698, %v1432_v1   ;;  %1598 = vperm.xlu1 %2696, %v1436_v50   ;;  %v1337_v25 = vpop.permute.xlu1 %1336  ;;  %v1357_v37 = vpop.permute.xlu2 %1356  ;;  %v1143_v1 = vsel %vm1135_vm4, %v3491_v22, %v3528_v56  ;;  %v664_v22 = vmul.f32 %v3277_v13, %v3604_v48 }
 0x306   : > { %v3722_v62 = vsel %vm1376_vm5, %v1337_v25, %v1339_v46  ;;  %v1335_v21 = vpop.permute.xlu0 %1334  ;;  %v1175_v50 = vadd.f32 %v1143_v1, %v934_v58 }
 0x307   : > { %v3725_v38 = vsel %vm1376_vm5, %v1333_v47, %v1335_v21 }
 0x30c   : > { %1578 = vperm.xlu2 %2697, %v1431_v19  }
 0x30d   : > { %1562 = vperm.xlu0 %2698, %v3637_v35   ;;  %1590 = vperm.xlu1 %2696, %v1434_v42   ;;  %v1343_v39 = vpop.permute.xlu1 %1342  ;;  %v1363_v52 = vpop.permute.xlu2 %1362 }
 0x30e   : > { %v1341_v27 = vpop.permute.xlu0 %1340 }
 0x30f   : > { %v1384_v47 = vsel %vm1376_vm5, %v1341_v27, %v1343_v39  ;;  %v4551_v27 = vld [vmem:[#allocation23_spill] sm:$0xff] }
 0x310   : > { %v1416_v46 = vadd.f32 %v1384_v47, %v1175_v50 }
 0x314   : > { %1574 = vperm.xlu2 %2697, %v3665_v20   ;;  %v905_v20 = vsel %vm894_vm3, %v4546_v44, %v4545_v45 }
 0x315   : > { %1558 = vperm.xlu0 %2698, %v3642_v7   ;;  %1570 = vperm.xlu1 %2696, %v3655_v0   ;;  %v1349_v10 = vpop.permute.xlu1 %1348  ;;  %v3738_v19 = vpop.permute.xlu2 %1368  ;;  %v937_v7 = vadd.f32 %v905_v20, %v664_v22  ;;  %v1146_v0 = vsel %vm1135_vm4, %v3509_v5, %v3542_v17 }
 0x316   : > { %v3743_v56 = vsel %vm1376_vm5, %v1349_v10, %v1351_v4  ;;  %v1347_v35 = vpop.permute.xlu0 %1346 }
 0x317   : > { %v3746_v42 = vsel %vm1376_vm5, %v1345_v3, %v1347_v35  ;;  %v1178_v2 = vadd.f32 %v1146_v0, %v937_v7  ;;  %v4553_v7 = vld [vmem:[#allocation25_spill] sm:$0xff]  ;;  %v4554_v0 = vld [vmem:[#allocation20_spill] sm:$0xff] }
 0x31c   : > { %1554 = vperm.xlu2 %2697, %v3647_v15   ;;  %v4547_v15 = vld [vmem:[#allocation22_spill] sm:$0xff] }
 0x31d   : > { %1566 = vperm.xlu1 %2696, %v3660_v16   ;;  %v1355_v13 = vpop.permute.xlu1 %1354  ;;  %v3756_v48 = vpop.permute.xlu2 %1374  ;;  %2701 = vset.pattern.permute.xlu0 %v4531_v23  ;;  %v899_v59 = vsel %vm894_vm3, %v4548_v57, %v4547_v15  ;;  %v4549_v16 = vld [vmem:[#allocation7_spill] sm:$0xff]  ;;  %v4555_v15 = vld [vmem:[#allocation12_spill] sm:$0xff] }
 0x31e   : > { %v1353_v30 = vpop.permute.xlu0 %1352  ;;  %v658_v63 = vmul.f32 %v4549_v16, %v3227_v55 }
 0x31f   : > { %v1387_v3 = vsel %vm1376_vm5, %v1353_v30, %v1355_v13  ;;  %v898_v13 = vsel %vm894_vm3, %v4554_v0, %v4553_v7 }
 0x320   : > { %v3760_v60 = vadd.f32 %v1387_v3, %v1178_v2  ;;  %v931_v8 = vadd.f32 %v899_v59, %v658_v63  ;;  %v2712_v3 = vld [vmem:[#allocation2 + $0x30] sm:$0xff] }
 0x322   : > { %v1172_v31 = vadd.f32 %v1140_v51, %v931_v8  ;;  %v3819_v51 = vld [vmem:[%s4472_s5] sm:$0xff] }
 0x324   : > { %2700 = vset.pattern.permute.xlu2 %v4531_v23  ;;  %v1413_v58 = vadd.f32 %v1381_v18, %v1172_v31  ;;  %v1137_v18 = vsel %vm1135_vm4, %v3467_v24, %v3498_v26  ;;  %v1139_v24 = vsel %vm1135_vm4, %v3507_v32, %v3505_v28  ;;  %v4556_v31 = vld [vmem:[#allocation35_spill] sm:$0xff] }
 0x325   : > { %v1361_v17 = vpop.permute.xlu1 %1360  ;;  %v1454_v5 = vpop.permute.xlu2 %1453  ;;  %2699 = vset.pattern.permute.xlu1 %v4531_v23 }
 0x326   : > { %v3770_v4 = vsel %vm1376_vm5, %v1361_v17, %v1363_v52  ;;  %v3772_v43 = vadd.f32 %v1454_v5, %v1411_v61  ;;  %v1359_v25 = vpop.permute.xlu0 %1358  ;;  %v4550_v61 = vld [vmem:[#allocation19_spill] sm:$0xff]  ;;  %1723 = vperm.xlu1 %2699, %v3819_v51  }
 0x327   : > { %v3778_v21 = vsel %vm1376_vm5, %v1357_v37, %v1359_v25  ;;  %v896_v50 = vsel %vm894_vm3, %v4551_v27, %v4550_v61  ;;  %v655_v37 = vmul.f32 %v2711_v6, %v4552_v49  ;;  %v4558_v61 = vld [vmem:[#allocation15_spill] sm:$0xff]  ;;  %v4559_v49 = vld [vmem:[#allocation44_spill] sm:$0xff] }
 0x328   : > { %v662_v27 = vmul.f32 %v4558_v61, %v3251_v33  ;;  %v1151_v33 = vsel %vm1135_vm4, %v3554_v9, %v3552_v12  ;;  %v4564_v12 = vld [vmem:[#allocation8_spill] sm:$0xff]  ;;  %vm1539_vm1 = vcmp.ge.f32.partialorder %v3772_v43, 0.0 }
 0x329   : > { %v928_v45 = vadd.f32 %v896_v50, %v655_v37  ;;  %v1144_v50 = vsel %vm1135_vm4, %v3526_v36, %v3500_v29  ;;  %v4560_v37 = vld [vmem:[#allocation39_spill] sm:$0xff] }
 0x32a   : > { %v3853_v29 = vld [vmem:[%s4472_s5 + $0x28] sm:$0xff] }
 0x32b   : > { %v1169_v44 = vadd.f32 %v1137_v18, %v928_v45  ;;  %v910_v18 = vsel %vm894_vm3, %v4560_v37, %v4559_v49 }
 0x32d   : > { %v3780_v1 = vpop.permute.xlu1 %1366  ;;  %v1464_v39 = vpop.permute.xlu2 %1463  ;;  %v1410_v20 = vadd.f32 %v3700_v53, %v1169_v44 }
 0x32e   : > { %v3782_v55 = vadd.f32 %v1464_v39, %v1413_v58  ;;  %v3784_v52 = vpop.permute.xlu0 %1364  ;;  %v4557_v58 = vld [vmem:[#allocation33_spill] sm:$0xff] }
 0x32f   : > { %v903_v39 = vsel %vm894_vm3, %v4557_v58, %v4556_v31  ;;  %v4567_v31 = vld [vmem:[#allocation17_spill] sm:$0xff] }
 0x330   : > { %v935_v6 = vadd.f32 %v903_v39, %v662_v27 }
 0x332   : > { %v1176_v0 = vadd.f32 %v1144_v50, %v935_v6  ;;  %v4570_v50 = vld [vmem:[#allocation52_spill] sm:$0xff]  ;;  %v4571_v6 = vld [vmem:[#allocation58_spill] sm:$0xff] }
 0x333   : > { %v1150_v49 = vsel %vm1135_vm4, %v4571_v6, %v4570_v50  ;;  %v4580_v50 = vld [vmem:[#allocation56_spill] sm:$0xff]  ;;  %v4581_v6 = vld [vmem:[#allocation57_spill] sm:$0xff] }
 0x335   : > { %v1479_v47 = vpop.permute.xlu2 %1478  ;;  %v1373_v10 = vpop.permute.xlu1 %1372 }
 0x336   : > { %v3790_v22 = vadd.f32 %v1479_v47, %v1416_v46  ;;  %v1371_v35 = vpop.permute.xlu0 %1370  ;;  %v657_v46 = vmul.f32 %v2712_v3, %v4555_v15  ;;  %v4562_v3 = vld [vmem:[#allocation30_spill] sm:$0xff] }
 0x338   : > { %v930_v26 = vadd.f32 %v898_v13, %v657_v46  ;;  %v1392_v13 = vsel %vm1376_vm5, %v1373_v10, %v3756_v48  ;;  %v668_v48 = vmul.f32 %v4567_v31, %v3299_v41  ;;  %v4568_v10 = vld [vmem:[#allocation50_spill] sm:$0xff]  ;;  %v1391_v41 = vsel %vm1376_vm5, %v3738_v19, %v1371_v35 }
 0x339   : > { %v2714_v19 = vld [vmem:[%s2935_s23 + $0x40] sm:$0xff]  ;;  %vm1544_vm15 = vcmp.ge.f32.partialorder %v3790_v22, 0.0 }
 0x33a   : > { %v1171_v53 = vadd.f32 %v1139_v24, %v930_v26  ;;  %v2713_v24 = vld [vmem:[#allocation2 + $0x60] sm:$0xff]  ;;  %v4565_v26 = vld [vmem:[#allocation43_spill] sm:$0xff] }
 0x33b   : > { %v660_v9 = vmul.f32 %v2713_v24, %v4564_v12  ;;  %v4574_v12 = vld [vmem:[#allocation41_spill] sm:$0xff] }
 0x33c   : > { %v1412_v17 = vadd.f32 %v3714_v14, %v1171_v53  ;;  %v3825_v14 = vld [vmem:[%s4472_s5 + $0x18] sm:$0xff]  ;;  %v4566_v53 = vld [vmem:[#allocation42_spill] sm:$0xff] }
 0x33d   : > { %v3799_v30 = vpop.permute.xlu2 %1493  ;;  %v1449_v2 = vpop.permute.xlu1 %1448  ;;  %1738 = vperm.xlu1 %2699, %v3825_v14  }
 0x33e   : > { %v3802_v57 = vadd.f32 %v1449_v2, %v1410_v20  ;;  %v3804_v59 = vpop.permute.xlu0 %1443  ;;  %v4561_v20 = vld [vmem:[#allocation13_spill] sm:$0xff]  ;;  %v1417_v2 = vadd.f32 %v3746_v42, %v1176_v0  ;;  %v4569_v42 = vld [vmem:[#allocation51_spill] sm:$0xff] }
 0x33f   : > { %v669_v7 = vmul.f32 %v4561_v20, %v3313_v34  ;;  %v4563_v34 = vld [vmem:[#allocation24_spill] sm:$0xff]  ;;  %v1142_v58 = vsel %vm1135_vm4, %v4569_v42, %v4568_v10  ;;  %v2717_v10 = vld [vmem:[%s2935_s23 + $0x78] sm:$0xff] }
 0x340   : > { %v901_v15 = vsel %vm894_vm3, %v4563_v34, %v4562_v3  ;;  %v1390_v3 = vsel %vm1376_vm5, %v3784_v52, %v3780_v1  ;;  %v2716_v52 = vld [vmem:[#allocation2 + $0x50] sm:$0xff] }
 0x341   : > { %v942_v36 = vadd.f32 %v910_v18, %v669_v7  ;;  %v933_v27 = vadd.f32 %v901_v15, %v660_v9  ;;  %v4572_v15 = vld [vmem:[#allocation29_spill] sm:$0xff]  ;;  %v4575_v9 = vld [vmem:[#allocation34_spill] sm:$0xff] }
 0x343   : > { %v1183_v46 = vadd.f32 %v1151_v33, %v942_v36  ;;  %v1174_v0 = vadd.f32 %v1142_v58, %v933_v27  ;;  %v3881_v33 = vld [vmem:[%s4472_s5 + $0x40] sm:$0xff]  ;;  %v4578_v58 = vld [vmem:[#allocation45_spill] sm:$0xff] }
 0x345   : > { %v3810_v5 = vpop.permute.xlu2 %1513  ;;  %v1459_v16 = vpop.permute.xlu1 %1458  ;;  %1748 = vperm.xlu1 %2699, %v3853_v29   ;;  %v1424_v61 = vadd.f32 %v1392_v13, %v1183_v46  ;;  %v1415_v34 = vadd.f32 %v3722_v62, %v1174_v0  ;;  %v4573_v46 = vld [vmem:[#allocation27_spill] sm:$0xff]  ;;  %v4577_v62 = vld [vmem:[#allocation14_spill] sm:$0xff] }
 0x346   : > { %v3812_v63 = vadd.f32 %v1459_v16, %v1412_v17  ;;  %v3814_v25 = vpop.permute.xlu0 %1468  ;;  %v909_v17 = vsel %vm894_vm3, %v4566_v53, %v4565_v26  ;;  %v900_v24 = vsel %vm894_vm3, %v4573_v46, %v4572_v15  ;;  %v659_v31 = vmul.f32 %v2716_v52, %v4577_v62  ;;  %v2718_v46 = vld [vmem:[#allocation2] sm:$0xff]  ;;  %v2720_v52 = vld [vmem:[%s2935_s23 + $0x70] sm:$0xff] }
 0x347   : > { %v941_v20 = vadd.f32 %v909_v17, %v668_v48  ;;  %v2715_v17 = vld [vmem:[#allocation2 + $0xc0] sm:$0xff] }
 0x348   : > { %vm1540_vm5 = vcmp.ge.f32.partialorder %v3812_v63, 0.0 }
 0x349   : > { %v1182_v36 = vadd.f32 %v1150_v49, %v941_v20  ;;  %v1148_v49 = vsel %vm1135_vm4, %v4581_v6, %v4580_v50  ;;  %v932_v20 = vadd.f32 %v900_v24, %v659_v31  ;;  %v4582_v24 = vld [vmem:[#allocation10_spill] sm:$0xff]  ;;  %v2722_v6 = vld [vmem:[%s2935_s23 + $0x68] sm:$0xff] }
 0x34b   : > { %v1423_v26 = vadd.f32 %v1391_v41, %v1182_v36 }
 0x34d   : > { %v1474_v8 = vpop.permute.xlu1 %1473  ;;  %1763 = vperm.xlu1 %2699, %v3881_v33  }
 0x34e   : > { %v1484_v28 = vpop.permute.xlu0 %1483  ;;  %v1615_v32 = vpop.permute.xlu2 %1614  ;;  %v1527_v48 = vadd.f32 %v1474_v8, %v1415_v34 }
 0x34f   : > { %v1529_v16 = vadd.f32 %v1484_v28, %v1417_v2 }
 0x350   : > { %vm1543_vm8 = vcmp.ge.f32.partialorder %v1527_v48, 0.0 }
 0x351   : > { %vm1545_vm6 = vcmp.ge.f32.partialorder %v1529_v16, 0.0 }
 0x355   : > { %v3836_v47 = vpop.permute.xlu1 %1488 }
 0x356   : > { %v3841_v45 = vpop.permute.xlu0 %1498  ;;  %v3843_v44 = vpop.permute.xlu2 %1606 }
 0x35d   : > { %v3871_v39 = vpop.permute.xlu1 %1503 }
 0x35e   : > { %v1519_v37 = vpop.permute.xlu0 %1518  ;;  %v1587_v18 = vpop.permute.xlu2 %1586 }
 0x35f   : > { %v1536_v28 = vadd.f32 %v1519_v37, %v1424_v61  ;;  %v1625_v7 = vmul.f32 %v1587_v18, %v1529_v16  ;;  %v4579_v61 = vld [vmem:[#allocation48_spill] sm:$0xff]  ;;  %v1535_v37 = vadd.f32 %v3810_v5, %v1423_v26  ;;  %v1422_v18 = vadd.f32 %v1390_v3, %v3623_v54  ;;  %v3917_v54 = vld [vmem:[%s4472_s5 + $0x58] sm:$0xff] }
 0x360   : > { %v1141_v27 = vsel %vm1135_vm4, %v4579_v61, %v4578_v58  ;;  %v3922_v5 = vld [vmem:[%s4472_s5 + $0x10] sm:$0xff]  ;;  %1778 = vperm.xlu1 %2699, %v3917_v54   ;;  %v4588_v61 = vld [vmem:[#allocation38_spill] sm:$0xff] }
 0x361   : > { %vm1552_vm7 = vcmp.ge.f32.partialorder %v1536_v28, 0.0  ;;  %v1632_v13 = vmul.f32 %v1615_v32, %v1536_v28  ;;  %v1641_v2 = vsel %vm1545_vm6, %v1529_v16, %v1625_v7  ;;  %v907_v32 = vsel %vm894_vm3, %v4575_v9, %v4574_v12  ;;  %v4576_v16 = vld [vmem:[#allocation11_spill] sm:$0xff]  ;;  %1733 = vperm.xlu0 %2701, %v3922_v5   ;;  %v2719_v26 = vld [vmem:[%s2935_s23 + $0x30] sm:$0xff] }
 0x362   : > { %v3889_v35 = vadd.f32 %v2714_v19, %v1641_v2  ;;  %v666_v1 = vmul.f32 %v2715_v17, %v4576_v16  ;;  %v3912_v19 = vld [vmem:[%s4472_s5 + $0x8] sm:$0xff]  ;;  %vm1551_vm9 = vcmp.ge.f32.partialorder %v1535_v37, 0.0  ;;  %v654_v12 = vmul.f32 %v2718_v46, %v4582_v24  ;;  %v4584_v17 = vld [vmem:[#allocation21_spill] sm:$0xff]  ;;  %v4585_v16 = vld [vmem:[#allocation18_spill] sm:$0xff] }
 0x363   : > { %v1648_v53 = vsel %vm1552_vm7, %v1536_v28, %v1632_v13  ;;  %v1173_v13 = vadd.f32 %v1141_v27, %v932_v20  ;;  %1728 = vperm.xlu2 %2700, %v3912_v19   ;;  %v1531_v20 = vadd.f32 %v3799_v30, %v3760_v60  ;;  %v3971_v46 = vld [vmem:[%s4472_s5 + $0x38] sm:$0xff] }
 0x364   : > { %v1664_v42 = vadd.f32 %v2717_v10, %v1648_v53  ;;  %1673 = vst [vmem:[#allocation2 + $0x80] sm:$0xff] %v3889_v35  ;;  %v939_v28 = vadd.f32 %v907_v32, %v666_v1  ;;  %v4586_v10 = vld [vmem:[#allocation16_spill] sm:$0xff] }
 0x365   : > { %v1414_v9 = vadd.f32 %v3725_v38, %v1173_v13  ;;  %v4587_v38 = vld [vmem:[#allocation40_spill] sm:$0xff]  ;;  %vm1547_vm12 = vcmp.ge.f32.partialorder %v1531_v20, 0.0 }
 0x366   : > { %v1509_v7 = vpop.permute.xlu0 %1508  ;;  %v1579_v8 = vpop.permute.xlu2 %1578  ;;  %1680 = vst [vmem:[#allocation2 + $0xf0] sm:$0xff] %v1664_v42  ;;  %v1180_v2 = vadd.f32 %v1148_v49, %v939_v28  ;;  %v906_v27 = vsel %vm894_vm3, %v4588_v61, %v4587_v38  ;;  %v2726_v38 = vld [vmem:[#allocation2 + $0x90] sm:$0xff]  ;;  %v4598_v61 = vld [vmem:[#allocation9_spill] sm:$0xff] }
 0x367   : > { %v1534_v0 = vadd.f32 %v1509_v7, %v1422_v18  ;;  %v1623_v41 = vmul.f32 %v1579_v8, %v1527_v48  ;;  %v1611_v36 = vpop.permute.xlu1 %1610  ;;  %v1526_v50 = vadd.f32 %v3814_v25, %v1414_v9 }
 0x368   : > { %v1631_v34 = vmul.f32 %v1611_v36, %v1535_v37  ;;  %v1421_v1 = vadd.f32 %v3770_v4, %v1180_v2  ;;  %v4591_v4 = vld [vmem:[#allocation47_spill] sm:$0xff] }
 0x369   : > { %vm1550_vm10 = vcmp.ge.f32.partialorder %v1534_v0, 0.0  ;;  %v1630_v3 = vmul.f32 %v3843_v44, %v1534_v0  ;;  %v1639_v15 = vsel %vm1543_vm8, %v1527_v48, %v1623_v41  ;;  %v895_v44 = vsel %vm894_vm3, %v4585_v16, %v4584_v17  ;;  %v2721_v48 = vld [vmem:[#allocation2 + $0xb0] sm:$0xff]  ;;  %v4593_v41 = vld [vmem:[#allocation55_spill] sm:$0xff]  ;;  %1758 = vperm.xlu0 %2701, %v3971_v46  }
 0x36a   : > { %v1647_v32 = vsel %vm1551_vm9, %v1535_v37, %v1631_v34  ;;  %v3931_v53 = vadd.f32 %v2719_v26, %v1639_v15  ;;  %v665_v58 = vmul.f32 %v2721_v48, %v4586_v10  ;;  %v4590_v37 = vld [vmem:[#allocation46_spill] sm:$0xff]  ;;  %v1533_v28 = vadd.f32 %v3871_v39, %v1421_v1  ;;  %v2723_v17 = vld [vmem:[%s2935_s23 + $0x28] sm:$0xff]  ;;  %v4596_v48 = vld [vmem:[#allocation36_spill] sm:$0xff] }
 0x36b   : > { %v1663_v62 = vadd.f32 %v2720_v52, %v1647_v32  ;;  %v1646_v31 = vsel %vm1550_vm10, %v1534_v0, %v1630_v3  ;;  %v1136_v18 = vsel %vm1135_vm4, %v4591_v4, %v4590_v37  ;;  %v927_v8 = vadd.f32 %v895_v44, %v654_v12  ;;  %v4592_v0 = vld [vmem:[#allocation49_spill] sm:$0xff]  ;;  %v3961_v39 = vld [vmem:[%s4472_s5 + $0x20] sm:$0xff]  ;;  %v4597_v10 = vld [vmem:[#allocation28_spill] sm:$0xff] }
 0x36c   : > { %4583 = vst [vmem:[#allocation32_spill] sm:$0xff] %v3931_v53  ;;  %v3945_v49 = vadd.f32 %v2722_v6, %v1646_v31  ;;  %v1147_v25 = vsel %vm1135_vm4, %v4593_v41, %v4592_v0  ;;  %v938_v13 = vadd.f32 %v906_v27, %v665_v58  ;;  %vm1542_vm11 = vcmp.ge.f32.partialorder %v1526_v50, 0.0  ;;  %1743 = vperm.xlu2 %2700, %v3961_v39   ;;  %v2724_v1 = vld [vmem:[%s2935_s23 + $0x60] sm:$0xff]  ;;  %v4599_v6 = vld [vmem:[#allocation53_spill] sm:$0xff] }
 0x36d   : > { %1671 = vst [vmem:[#allocation2 + $0x60] sm:$0xff] %v3931_v53  ;;  %v1704_v7 = vpack.c.bf16 %v1664_v42, %v1663_v62  ;;  %v1168_v15 = vadd.f32 %v1136_v18, %v927_v8  ;;  %v3966_v42 = vld [vmem:[%s4472_s5 + $0x70] sm:$0xff]  ;;  %vm1549_vm13 = vcmp.ge.f32.partialorder %v1533_v28, 0.0  ;;  %v904_v58 = vsel %vm894_vm3, %v4597_v10, %v4596_v48  ;;  %v4600_v37 = vld [vmem:[#allocation54_spill] sm:$0xff] }
 0x36e   : > { %4589 = vst [vmem:[#allocation31_spill] sm:$0xff] %v3945_v49  ;;  %v1575_v36 = vpop.permute.xlu2 %1574  ;;  %v1179_v24 = vadd.f32 %v1147_v25, %v938_v13  ;;  %1793 = vperm.xlu1 %2699, %v3966_v42   ;;  %v663_v27 = vmul.f32 %v2726_v38, %v4598_v61  ;;  %v1145_v4 = vsel %vm1135_vm4, %v4600_v37, %v4599_v6  ;;  %v4009_v8 = vld [vmem:[%s4472_s5 + $0x50] sm:$0xff]  ;;  %v1717_v38 = vld [vmem:[%s4472_s5 + $0x60] sm:$0xff]  ;;  %vm1541_vm3 = vcmp.ge.f32.partialorder %v3782_v55, 0.0 }
 0x36f   : > { %1679 = vst [vmem:[#allocation2 + $0xe0] sm:$0xff] %v1663_v62  ;;  %v1622_v2 = vmul.f32 %v1575_v36, %v1526_v50  ;;  %v1603_v34 = vpop.permute.xlu1 %1602  ;;  %1849 = vmatpush.bf16.msra.mxu0 %v1704_v7  ;;  %2601 = vmatpush.bf16.msra.mxu2 %v1704_v7  ;;  %v1595_v3 = vpop.permute.xlu0 %1594  ;;  %v1409_v9 = vadd.f32 %v3632_v11, %v1168_v15  ;;  %v2725_v62 = vld [vmem:[%s2935_s23 + $0x50] sm:$0xff]  ;;  %vm1538_vm4 = vcmp.ge.f32.partialorder %v3802_v57, 0.0  ;;  %v2732_v37 = vld [vmem:[%s2935_s23 + $0x20] sm:$0xff] }
 0x370   : > { %1678 = vst [vmem:[#allocation2 + $0xd0] sm:$0xff] %v3945_v49  ;;  %v1629_v60 = vmul.f32 %v1603_v34, %v1533_v28  ;;  %v1627_v30 = vmul.f32 %v1595_v3, %v1531_v20  ;;  %v1420_v44 = vadd.f32 %v3778_v21, %v1179_v24  ;;  %v2727_v34 = vld [vmem:[%s2935_s23] sm:$0xff]  ;;  %v2729_v24 = vld [vmem:[%s2935_s23 + $0x38] sm:$0xff]  ;;  %v2731_v10 = vld [vmem:[%s2935_s23 + $0x10] sm:$0xff] }
 0x371   : > { %v1638_v12 = vsel %vm1542_vm11, %v1526_v50, %v1622_v2  ;;  %v1521_v11 = vadd.f32 %v3804_v59, %v1409_v9  ;;  %v936_v59 = vadd.f32 %v904_v58, %v663_v27  ;;  %1773 = vperm.xlu0 %2701, %v4009_v8  }
 0x372   : > { %v1645_v32 = vsel %vm1549_vm13, %v1533_v28, %v1629_v60  ;;  %v1643_v26 = vsel %vm1547_vm12, %v1531_v20, %v1627_v30  ;;  %v3977_v16 = vadd.f32 %v2723_v17, %v1638_v12  ;;  %v1532_v50 = vadd.f32 %v3841_v45, %v1420_v44  ;;  %v4004_v45 = vld [vmem:[%s4472_s5 + $0x30] sm:$0xff]  ;;  %v2728_v60 = vld [vmem:[%s2935_s23 + $0x58] sm:$0xff] }
 0x373   : > { %v3982_v52 = vadd.f32 %v2724_v1, %v1645_v32  ;;  %v3985_v31 = vadd.f32 %v2725_v62, %v1643_v26  ;;  %vm1537_vm14 = vcmp.ge.f32.partialorder %v1521_v11, 0.0  ;;  %v1177_v25 = vadd.f32 %v1145_v4, %v936_v59  ;;  %v2730_v62 = vld [vmem:[%s2935_s23 + $0x48] sm:$0xff] }
 0x374   : > { %4594 = vst [vmem:[#allocation37_spill] sm:$0xff] %v3977_v16  ;;  %vm1548_vm0 = vcmp.ge.f32.partialorder %v1532_v50, 0.0  ;;  %1753 = vperm.xlu2 %2700, %v4004_v45  }
 0x375   : > { %4595 = vst [vmem:[#allocation22_spill] sm:$0xff] %v3982_v52  ;;  %v1703_v21 = vpack.c.bf16 %v3945_v49, %v3982_v52  ;;  %v1418_v15 = vadd.f32 %v3743_v56, %v1177_v25  ;;  %v4037_v56 = vld [vmem:[%s4472_s5 + $0x48] sm:$0xff] }
 0x376   : > { %1670 = vst [vmem:[#allocation2 + $0x50] sm:$0xff] %v3977_v16  ;;  %v1555_v18 = vpop.permute.xlu2 %1554  ;;  %2703 = vset.pattern.permute.xlu1 %v4543_v40  ;;  %v4250_v49 = vld [vmem:[%s4474_s7 + $0x48] sm:$0xff] }
 0x377   : > { %1677 = vst [vmem:[#allocation2 + $0xc0] sm:$0xff] %v3982_v52  ;;  %v1617_v20 = vmul.f32 %v1555_v18, %v1521_v11  ;;  %v1599_v28 = vpop.permute.xlu1 %1598  ;;  %1850 = vmatpush.bf16.msra.mxu0 %v1703_v21  ;;  %2602 = vmatpush.bf16.msra.mxu2 %v1703_v21  ;;  %v1583_v7 = vpop.permute.xlu0 %1582  ;;  %v1530_v9 = vadd.f32 %v3836_v47, %v1418_v15  ;;  %v2733_v18 = vld [vmem:[%s2935_s23 + $0x8] sm:$0xff] }
 0x378   : > { %1675 = vst [vmem:[#allocation2 + $0xa0] sm:$0xff] %v3985_v31  ;;  %v1628_v0 = vmul.f32 %v1599_v28, %v1532_v50  ;;  %v1624_v41 = vmul.f32 %v1583_v7, %v3790_v22  ;;  %1919 = vperm.xlu1 %2703, %v3912_v19   ;;  %v1718_v19 = vld [vmem:[%s4472_s5 + $0x68] sm:$0xff]  ;;  %v2734_v7 = vld [vmem:[%s2935_s23 + $0x18] sm:$0xff]  ;;  %s2751_s23 = scalar_lea.hbm %s2750_s19, 128 }
 0x379   : > { %v1633_v36 = vsel %vm1537_vm14, %v1521_v11, %v1617_v20  ;;  %vm1546_vm2 = vcmp.ge.f32.partialorder %v1530_v9, 0.0  ;;  %1788 = vperm.xlu0 %2701, %v1718_v19   ;;  %p2752_p12 = scmp.ne.s32.totalorder %s2750_s19, %s2751_s23  ;;  %p2757_p2 = scmp.lt.s32.totalorder %s2755_s24, %s2751_s23 }
 0x37a   : > { %v1644_v13 = vsel %vm1548_vm0, %v1532_v50, %v1628_v0  ;;  %v1640_v2 = vsel %vm1544_vm15, %v3790_v22, %v1624_v41  ;;  %v4018_v3 = vadd.f32 %v2727_v34, %v1633_v36  ;;  %v2585_v36 = vld [vmem:[%s4471_s4 + $0x8] sm:$0xff] }
 0x37b   : > { %v4022_v30 = vadd.f32 %v2728_v60, %v1644_v13  ;;  %v4025_v12 = vadd.f32 %v2729_v24, %v1640_v2  ;;  %p2753_p13 = pnand %p2752_p12, %p2910_p4  ;;  %p2758_p3 = por %p2757_p2, %p2756_p1 }
 0x37c   : > { %1665 = vst [vmem:[#allocation2] sm:$0xff] %v4018_v3  ;;  %1768 = vperm.xlu2 %2700, %v4037_v56  }
 0x37d   : > { %4601 = vst [vmem:[#allocation26_spill] sm:$0xff] %v4022_v30  ;;  %v1702_v22 = vpack.c.bf16 %v4022_v30, %v3985_v31  ;;  %v1700_v50 = vpack.c.bf16 %v4025_v12, %v3931_v53  ;;  %p2754_p0 = pneg %p2753_p13 }
 0x37e   : > { %4602 = vst [vmem:[#allocation7_spill] sm:$0xff] %v4025_v12 }
 0x37f   : > { %1676 = vst [vmem:[#allocation2 + $0xb0] sm:$0xff] %v4022_v30  ;;  %v1591_v32 = vpop.permute.xlu1 %1590  ;;  %1851 = vmatpush.bf16.msra.mxu0 %v1702_v22  ;;  %2603 = vmatpush.bf16.msra.mxu2 %v1702_v22  ;;  %v1563_v47 = vpop.permute.xlu0 %1562  ;;  %p2759_p5 = pnand %p2758_p3, %p2754_p0 }
 0x380   : > { %1672 = vst [vmem:[#allocation2 + $0x70] sm:$0xff] %v4025_v12  ;;  %v1626_v26 = vmul.f32 %v1591_v32, %v1530_v9  ;;  %v1619_v17 = vmul.f32 %v1563_v47, %v3772_v43  ;;  %1971 = vperm.xlu1 %2703, %v3966_v42   ;;  %v4217_v12 = vld [vmem:[%s4474_s7 + $0x18] sm:$0xff] }
 0x381   : > { %2702 = vset.pattern.permute.xlu0 %v4543_v40 }
 0x382   : > { %v1642_v44 = vsel %vm1546_vm2, %v1530_v9, %v1626_v26  ;;  %v1635_v1 = vsel %vm1539_vm1, %v3772_v43, %v1619_v17  ;;  %1915 = vperm.xlu0 %2702, %v3819_v51  }
 0x383   : > { %v4047_v48 = vadd.f32 %v2730_v62, %v1642_v44  ;;  %v4050_v58 = vadd.f32 %v2731_v10, %v1635_v1 }
 0x384   : > { %1783 = vperm.xlu2 %2700, %v1717_v38  }
 0x385   : > { %1674 = vst [vmem:[#allocation2 + $0x90] sm:$0xff] %v4047_v48  ;;  %v1701_v11 = vpack.c.bf16 %v4047_v48, %v3889_v35 }
 0x386   : > { %1667 = vst [vmem:[#allocation2 + $0x20] sm:$0xff] %v4050_v58 }
 0x387   : > { %v1571_v43 = vpop.permute.xlu1 %1570  ;;  %1852 = vmatpush.bf16.msra.mxu0 %v1701_v11  ;;  %2604 = vmatpush.bf16.msra.mxu2 %v1701_v11  ;;  %v1559_v61 = vpop.permute.xlu0 %1558 }
 0x388   : > { %v1621_v27 = vmul.f32 %v1571_v43, %v3782_v55  ;;  %v1618_v42 = vmul.f32 %v1559_v61, %v3802_v57  ;;  %1967 = vperm.xlu1 %2703, %v1718_v19  }
 0x38a   : > { %v1637_v21 = vsel %vm1541_vm3, %v3782_v55, %v1621_v27  ;;  %v1634_v6 = vsel %vm1538_vm4, %v3802_v57, %v1618_v42  ;;  %v1720_v55 = vld [vmem:[%s4472_s5 + $0x78] sm:$0xff]  ;;  %1963 = vperm.xlu0 %2702, %v1717_v38  }
 0x38b   : > { %1853 = vmatpush.bf16.msra.mxu0 %v1700_v50  ;;  %2605 = vmatpush.bf16.msra.mxu2 %v1700_v50  ;;  %v4071_v4 = vadd.f32 %v2732_v37, %v1637_v21  ;;  %v4074_v59 = vadd.f32 %v2733_v18, %v1634_v6  ;;  %v4185_v21 = vld [vmem:[%s4474_s7 + $0x10] sm:$0xff] }
 0x38c   : > { %1798 = vperm.xlu2 %2700, %v1720_v55  }
 0x38d   : > { %4603 = vst [vmem:[#allocation19_spill] sm:$0xff] %v4071_v4  ;;  %v1699_v20 = vpack.c.bf16 %v3977_v16, %v4071_v4  ;;  %v1697_v25 = vpack.c.bf16 %v4074_v59, %v4018_v3  ;;  %v4255_v16 = vld [vmem:[%s4474_s7 + $0x40] sm:$0xff] }
 0x38e   : > { %1669 = vst [vmem:[#allocation2 + $0x40] sm:$0xff] %v4071_v4 }
 0x38f   : > { %1666 = vst [vmem:[#allocation2 + $0x10] sm:$0xff] %v4074_v59  ;;  %v1567_v57 = vpop.permute.xlu1 %1566  ;;  %1854 = vmatpush.bf16.msra.mxu0 %v1699_v20  ;;  %2606 = vmatpush.bf16.msra.mxu2 %v1699_v20 }
 0x390   : > { %v1620_v51 = vmul.f32 %v1567_v57, %v3812_v63  ;;  %1947 = vperm.xlu1 %2703, %v3881_v33   ;;  %v2588_v33 = vld [vmem:[%s4471_s4 + $0x20] sm:$0xff] }
 0x392   : > { %v1636_v28 = vsel %vm1540_vm5, %v3812_v63, %v1620_v51  ;;  %v2584_v63 = vld [vmem:[%s4471_s4] sm:$0xff]  ;;  %1959 = vperm.xlu0 %2702, %v3917_v54   ;;  %v2590_v54 = vld [vmem:[%s4471_s4 + $0x30] sm:$0xff] }
 0x393   : > { %v4087_v0 = vadd.f32 %v2734_v7, %v1636_v28 }
 0x394   : > { %2704 = vset.pattern.permute.xlu2 %v4543_v40 }
 0x395   : > { %1668 = vst [vmem:[#allocation2 + $0x30] sm:$0xff] %v4087_v0  ;;  %v1698_v41 = vpack.c.bf16 %v4087_v0, %v4050_v58  ;;  %1923 = vperm.xlu2 %2704, %v3922_v5   ;;  %v2589_v5 = vld [vmem:[%s4471_s4 + $0x28] sm:$0xff] }
 0x397   : > { %1855 = vmatpush.bf16.msra.mxu0 %v1698_v41  ;;  %2607 = vmatpush.bf16.msra.mxu2 %v1698_v41  ;;  %v2034_v41 = vld [vmem:[%s4474_s7] sm:$0xff] }
 0x398   : > { %1943 = vperm.xlu1 %2703, %v3971_v46   ;;  %v2591_v46 = vld [vmem:[%s4471_s4 + $0x38] sm:$0xff]  ;;  %v4142_v34 = vpop.permute.xlu1 %1723 }
 0x39a   : > { %1939 = vperm.xlu0 %2702, %v4004_v45  }
 0x39b   : > { %1856 = vmatpush.bf16.msra.mxu0 %v1697_v25  ;;  %2608 = vmatpush.bf16.msra.mxu2 %v1697_v25  ;;  %v4206_v25 = vld [vmem:[%s4474_s7 + $0x38] sm:$0xff] }
 0x39d   : > { %1975 = vperm.xlu2 %2704, %v1720_v55   ;;  %v4195_v55 = vld [vmem:[%s4474_s7 + $0x20] sm:$0xff] }
 0x39e   : > { %1857 = vmatmul.bf16.vlgmr.msra.gmra.mxu0 %v2584_v63  ;;  %1877 = vmatmul.bf16.vlgmr.msra.gmra.mxu2 %v2588_v33 }
 0x3a0   : > { %1927 = vperm.xlu1 %2703, %v3825_v14   ;;  %v2586_v14 = vld [vmem:[%s4471_s4 + $0x10] sm:$0xff] }
 0x3a2   : > { %1935 = vperm.xlu0 %2702, %v3853_v29   ;;  %v2587_v29 = vld [vmem:[%s4471_s4 + $0x18] sm:$0xff] }
 0x3a5   : > { %1955 = vperm.xlu2 %2704, %v4009_v8  }
 0x3a8   : > { %2707 = vset.pattern.permute.xlu1 %v4531_v23 }
 0x3a9   : > { %2062 = vperm.xlu1 %2707, %v4185_v21  }
 0x3aa   : > { %2706 = vset.pattern.permute.xlu0 %v4531_v23 }
 0x3ad   : > { %1951 = vperm.xlu2 %2704, %v4037_v56  }
 0x3ae   : > { %1862 = vmatmul.bf16.gmra.mxu0 %v2585_v36  ;;  %1882 = vmatmul.bf16.gmra.mxu2 %v2589_v5 }
 0x3af   : > { %v4148_v24 = vpop.permute.xlu1 %1738 }
 0x3b1   : > { %2072 = vperm.xlu1 %2707, %v4195_v55  }
 0x3b5   : > { %1931 = vperm.xlu2 %2704, %v3961_v39  }
 0x3b7   : > { %v1749_v56 = vpop.permute.xlu1 %1748 }
 0x3b9   : > { %2087 = vperm.xlu1 %2707, %v4206_v25  }
 0x3bd   : > { %2705 = vset.pattern.permute.xlu2 %v4531_v23  ;;  %v4132_v45 = vpop.permute.xlu2 %1728 }
 0x3be   : > { %1867 = vmatmul.bf16.gmra.mxu0 %v2586_v14  ;;  %1887 = vmatmul.bf16.gmra.mxu2 %v2590_v54 }
 0x3bf   : > { %v4158_v26 = vpop.permute.xlu1 %1763  ;;  %2052 = vperm.xlu2 %2705, %v2034_v41  }
 0x3c6   : > { %v1744_v8 = vpop.permute.xlu2 %1743 }
 0x3c7   : > { %2067 = vperm.xlu2 %2705, %v4217_v12  }
 0x3ce   : > { %1872 = vmatmul.bf16.gmra.mxu0 %v2587_v29  ;;  %1892 = vmatmul.bf16.gmra.mxu2 %v2591_v46  ;;  %v4134_v13 = vpop.permute.xlu2 %1753 }
 0x3d2   : > { %v4168_v10 = vpop.permute.xlu1 %1778 }
 0x3d3   : > { %v4136_v39 = vpop.permute.xlu0 %1733 }
 0x3d6   : > { %v4138_v2 = vpop.permute.xlu2 %1768 }
 0x3db   : > { %v4140_v23 = vpop.permute.xlu0 %1758 }
 0x3de   : > { %v4144_v15 = vpop.permute.xlu2 %1783 }
 0x3e0   : > { %v1794_v42 = vpop.permute.xlu1 %1793 }
 0x3e3   : > { %v4146_v60 = vpop.permute.xlu0 %1773 }
 0x3e6   : > { %v4150_v9 = vpop.permute.xlu2 %1798 }
 0x3ea   : > { %v4197_v57 = vpop.permute.xlu1 %1919 }
 0x3eb   : > { %v1789_v22 = vpop.permute.xlu0 %1788 }
 0x3ef   : > { %v4152_v19 = vpop.permute.xlu2 %1923 }
 0x3f2   : > { %v1972_v54 = vpop.permute.xlu1 %1971 }
 0x3f4   : > { %v4156_v47 = vpop.permute.xlu0 %1915 }
 0x3f7   : > { %v4164_v1 = vpop.permute.xlu2 %1975 }
 0x3fc   : > { %v4166_v62 = vpop.permute.xlu0 %1963 }
 0x3ff   : > { %v4174_v43 = vpop.permute.xlu2 %1955 }
 0x404   : > { %v4176_v61 = vpop.permute.xlu0 %1959 }
 0x407   : > { %v4188_v6 = vpop.permute.xlu2 %1951 }
 0x40c   : > { %v4190_v18 = vpop.permute.xlu0 %1939 }
 0x40f   : > { %v1932_v28 = vpop.permute.xlu2 %1931 }
 0x414   : > { %v1936_v33 = vpop.permute.xlu0 %1935 }
 0x41b   : > { %v4154_v32 = vpop.f32.mrf.mxu0 }
 0x421   : > { %v4160_v17 = vpop.f32.mrf.mxu2 }
 0x423   : > { %v4162_v44 = vpop.f32.mrf.mxu0 }
 0x429   : > { %v4170_v11 = vpop.f32.mrf.mxu2 }
 0x42b   : > { %v4172_v38 = vpop.f32.mrf.mxu0 }
 0x431   : > { %v4178_v27 = vpop.f32.mrf.mxu2 }
 0x433   : > { %v4180_v50 = vpop.f32.mrf.mxu0 }
 0x439   : > { %v1885_v37 = vpop.f32.mrf.mxu2 }
 0x43b   : > { %v1868_v20 = vpop.f32.mrf.mxu0 }
 0x43c   : > { %v1869_v51 = vadd.f32 %v1868_v20, %v1744_v8  ;;  %v4212_v20 = vld [vmem:[%s4474_s7 + $0x8] sm:$0xff] }
 0x43d   : > { %2057 = vperm.xlu0 %2706, %v4212_v20  }
 0x43e   : > { %v1982_v36 = vmul.f32 %v1932_v28, %v1869_v51  ;;  %vm1902_vm6 = vcmp.ge.f32.partialorder %v1869_v51, 0.0  ;;  %v1968_v28 = vpop.permute.xlu1 %1967 }
 0x440   : > { %v1998_v29 = vsel %vm1902_vm6, %v1869_v51, %v1982_v36  ;;  %v4226_v51 = vld [vmem:[%s4474_s7 + $0x50] sm:$0xff]  ;;  %v4237_v36 = vld [vmem:[%s4474_s7 + $0x28] sm:$0xff] }
 0x441   : > { %v1888_v7 = vpop.f32.mrf.mxu2  ;;  %2102 = vperm.xlu1 %2707, %v4226_v51   ;;  %2077 = vperm.xlu2 %2705, %v4237_v36  }
 0x442   : > { %v1889_v52 = vadd.f32 %v1888_v7, %v4144_v15  ;;  %v1884_v15 = vadd.f32 %v4178_v27, %v4146_v60  ;;  %v4278_v60 = vld [vmem:[%s4474_s7 + $0x58] sm:$0xff] }
 0x443   : > { %v1870_v63 = vpop.f32.mrf.mxu0 }
 0x444   : > { %v1871_v5 = vadd.f32 %v1870_v63, %v1749_v56  ;;  %vm1910_vm11 = vcmp.ge.f32.partialorder %v1889_v52, 0.0  ;;  %vm1908_vm13 = vcmp.ge.f32.partialorder %v1884_v15, 0.0 }
 0x446   : > { %v1983_v14 = vmul.f32 %v1936_v33, %v1871_v5  ;;  %vm1903_vm7 = vcmp.ge.f32.partialorder %v1871_v5, 0.0  ;;  %v4232_v33 = vld [vmem:[%s4474_s7 + $0x30] sm:$0xff] }
 0x447   : > { %2082 = vperm.xlu0 %2706, %v4232_v33  }
 0x448   : > { %v1999_v46 = vsel %vm1903_vm7, %v1871_v5, %v1983_v14  ;;  %v4244_v5 = vld [vmem:[%s4474_s7 + $0x68] sm:$0xff] }
 0x449   : > { %v1890_v8 = vpop.f32.mrf.mxu2  ;;  %v4219_v56 = vpack.c.bf16 %v1999_v46, %v1998_v29  ;;  %2117 = vperm.xlu1 %2707, %v4244_v5   ;;  %2092 = vperm.xlu2 %2705, %v4255_v16  }
 0x44a   : > { %v1891_v46 = vadd.f32 %v1890_v8, %v1789_v22  ;;  %v1948_v22 = vpop.permute.xlu1 %1947 }
 0x44b   : > { %v1873_v29 = vpop.f32.mrf.mxu0 }
 0x44c   : > { %v1991_v8 = vmul.f32 %v1968_v28, %v1891_v46  ;;  %vm1911_vm10 = vcmp.ge.f32.partialorder %v1891_v46, 0.0  ;;  %v4273_v28 = vld [vmem:[%s4474_s7 + $0x60] sm:$0xff] }
 0x44f   : > { %2097 = vperm.xlu0 %2706, %v4250_v49  }
 0x451   : > { %v1893_v63 = vpop.f32.mrf.mxu2  ;;  %2708 = vset.pattern.permute.xlu1 %v4543_v40  ;;  %2107 = vperm.xlu2 %2705, %v4278_v60  }
 0x452   : > { %v1894_v14 = vadd.f32 %v1893_v63, %v1794_v42  ;;  %v1886_v42 = vadd.f32 %v1885_v37, %v4168_v10  ;;  %2244 = vperm.xlu1 %2708, %v2034_v41   ;;  %v1881_v10 = vadd.f32 %v4170_v11, %v4138_v2  ;;  %v1988_v2 = vmul.f32 %v4174_v43, %v1884_v15  ;;  %v1944_v11 = vpop.permute.xlu1 %1943  ;;  %v4292_v43 = vld [vmem:[%s4474_s7 + $0x78] sm:$0xff] }
 0x454   : > { %v1992_v4 = vmul.f32 %v1972_v54, %v1894_v14  ;;  %vm1912_vm8 = vcmp.ge.f32.partialorder %v1894_v14, 0.0  ;;  %v1989_v37 = vmul.f32 %v4176_v61, %v1886_v42  ;;  %vm1909_vm12 = vcmp.ge.f32.partialorder %v1886_v42, 0.0 }
 0x455   : > { %v1987_v27 = vmul.f32 %v4188_v6, %v1881_v10  ;;  %vm1907_vm14 = vcmp.ge.f32.partialorder %v1881_v10, 0.0 }
 0x457   : > { %2112 = vperm.xlu0 %2706, %v4273_v28  }
 0x459   : > { %v1895_v53 = vpop.f32.mrf.mxu2 }
 0x45a   : > { %v1896_v30 = vadd.f32 %v1895_v53, %v4150_v9  ;;  %v1990_v53 = vmul.f32 %v4166_v62, %v1889_v52  ;;  %v2008_v9 = vsel %vm1912_vm8, %v1894_v14, %v1992_v4  ;;  %v1879_v4 = vadd.f32 %v4160_v17, %v4158_v26  ;;  %2256 = vperm.xlu1 %2708, %v4217_v12  }
 0x45b   : > { %v2005_v14 = vsel %vm1909_vm12, %v1886_v42, %v1989_v37  ;;  %v1874_v26 = vadd.f32 %v1873_v29, %v4134_v13  ;;  %v2004_v17 = vsel %vm1908_vm13, %v1884_v15, %v1988_v2  ;;  %v2003_v42 = vsel %vm1907_vm14, %v1881_v10, %v1987_v27 }
 0x45c   : > { %v1993_v63 = vmul.f32 %v4164_v1, %v1896_v30  ;;  %vm1913_vm9 = vcmp.ge.f32.partialorder %v1896_v30, 0.0  ;;  %v2007_v1 = vsel %vm1911_vm10, %v1891_v46, %v1991_v8  ;;  %v2006_v62 = vsel %vm1910_vm11, %v1889_v52, %v1990_v53 }
 0x45d   : > { %v2032_v61 = vpack.c.bf16 %v2007_v1, %v2006_v62  ;;  %v1986_v46 = vmul.f32 %v1948_v22, %v1879_v4  ;;  %v2031_v52 = vpack.c.bf16 %v2005_v14, %v2004_v17  ;;  %vm1906_vm15 = vcmp.ge.f32.partialorder %v1879_v4, 0.0 }
 0x45e   : > { %v2009_v7 = vsel %vm1913_vm9, %v1896_v30, %v1993_v63  ;;  %v1875_v30 = vpop.f32.mrf.mxu0  ;;  %v1984_v13 = vmul.f32 %v4190_v18, %v1874_v26  ;;  %vm1904_vm1 = vcmp.ge.f32.partialorder %v1874_v26, 0.0  ;;  %v1866_v22 = vadd.f32 %v4180_v50, %v4148_v24  ;;  %v1928_v63 = vpop.permute.xlu1 %1927 }
 0x45f   : > { %v2033_v54 = vpack.c.bf16 %v2009_v7, %v2008_v9  ;;  %v1876_v41 = vadd.f32 %v1875_v30, %v4140_v23  ;;  %v2048_v23 = vld [vmem:[%s4474_s7 + $0x70] sm:$0xff]  ;;  %v2002_v29 = vsel %vm1906_vm15, %v1879_v4, %v1986_v46  ;;  %2127 = vperm.xlu0 %2706, %v4292_v43   ;;  %v1864_v15 = vadd.f32 %v4172_v38, %v4136_v39 }
 0x460   : > { %2122 = vperm.xlu2 %2705, %v2048_v23   ;;  %v2030_v12 = vpack.c.bf16 %v2003_v42, %v2002_v29  ;;  %v2000_v53 = vsel %vm1904_vm1, %v1874_v26, %v1984_v13  ;;  %v1861_v9 = vadd.f32 %v4162_v44, %v4132_v45  ;;  %v1981_v7 = vmul.f32 %v1928_v63, %v1866_v22 }
 0x461   : > { %2178 = vmatpush.bf16.msra.mxu1 %v2033_v54  ;;  %2609 = vmatpush.bf16.msra.mxu3 %v2033_v54  ;;  %v1985_v6 = vmul.f32 %v1944_v11, %v1876_v41  ;;  %vm1905_vm0 = vcmp.ge.f32.partialorder %v1876_v41, 0.0  ;;  %vm1901_vm2 = vcmp.ge.f32.partialorder %v1866_v22, 0.0  ;;  %v1859_v24 = vadd.f32 %v4154_v32, %v4142_v34 }
 0x462   : > { %2264 = vperm.xlu1 %2708, %v4237_v36   ;;  %v1980_v50 = vmul.f32 %v4152_v19, %v1864_v15  ;;  %vm1900_vm3 = vcmp.ge.f32.partialorder %v1864_v15, 0.0  ;;  %v1979_v45 = vmul.f32 %v4197_v57, %v1861_v9  ;;  %v1997_v39 = vsel %vm1901_vm2, %v1866_v22, %v1981_v7  ;;  %v2598_v57 = vld [vmem:[%s4473_s6 + $0x30] sm:$0xff] }
 0x463   : > { %v2001_v8 = vsel %vm1905_vm0, %v1876_v41, %v1985_v6  ;;  %vm1899_vm4 = vcmp.ge.f32.partialorder %v1861_v9, 0.0  ;;  %v1978_v34 = vmul.f32 %v4156_v47, %v1859_v24  ;;  %vm1898_vm5 = vcmp.ge.f32.partialorder %v1859_v24, 0.0  ;;  %v2596_v47 = vld [vmem:[%s4473_s6 + $0x20] sm:$0xff] }
 0x464   : > { %v2029_v18 = vpack.c.bf16 %v2001_v8, %v2000_v53  ;;  %v1996_v19 = vsel %vm1900_vm3, %v1864_v15, %v1980_v50 }
 0x465   : > { %2179 = vmatpush.bf16.msra.mxu1 %v2032_v61  ;;  %2610 = vmatpush.bf16.msra.mxu3 %v2032_v61  ;;  %v2027_v32 = vpack.c.bf16 %v1997_v39, %v1996_v19  ;;  %v1994_v44 = vsel %vm1898_vm5, %v1859_v24, %v1978_v34 }
 0x467   : > { %2710 = vset.pattern.permute.xlu0 %v4543_v40 }
 0x468   : > { %2709 = vset.pattern.permute.xlu2 %v4543_v40  ;;  %2252 = vperm.xlu0 %2710, %v4185_v21   ;;  %v1995_v40 = vsel %vm1899_vm4, %v1861_v9, %v1979_v45  ;;  %v2592_v21 = vld [vmem:[%s4473_s6] sm:$0xff] }
 0x469   : > { %2180 = vmatpush.bf16.msra.mxu1 %v2031_v52  ;;  %2611 = vmatpush.bf16.msra.mxu3 %v2031_v52  ;;  %v2026_v38 = vpack.c.bf16 %v1995_v40, %v1994_v44 }
 0x46a   : > { %2248 = vperm.xlu2 %2709, %v4212_v20   ;;  %2276 = vperm.xlu1 %2708, %v4255_v16   ;;  %v2593_v16 = vld [vmem:[%s4473_s6 + $0x8] sm:$0xff]  ;;  %v2599_v20 = vld [vmem:[%s4473_s6 + $0x38] sm:$0xff] }
 0x46d   : > { %2181 = vmatpush.bf16.msra.mxu1 %v2030_v12  ;;  %2612 = vmatpush.bf16.msra.mxu3 %v2030_v12 }
 0x470   : > { %2272 = vperm.xlu0 %2710, %v4206_v25   ;;  %v2595_v25 = vld [vmem:[%s4473_s6 + $0x18] sm:$0xff] }
 0x471   : > { %2182 = vmatpush.bf16.msra.mxu1 %v2029_v18  ;;  %2613 = vmatpush.bf16.msra.mxu3 %v2029_v18 }
 0x472   : > { %2260 = vperm.xlu2 %2709, %v4195_v55   ;;  %2288 = vperm.xlu1 %2708, %v4278_v60   ;;  %v2597_v55 = vld [vmem:[%s4473_s6 + $0x28] sm:$0xff] }
 0x475   : > { %2183 = vmatpush.bf16.msra.mxu1 %v4219_v56  ;;  %2614 = vmatpush.bf16.msra.mxu3 %v4219_v56  ;;  %v2053_v56 = vpop.permute.xlu2 %2052 }
 0x478   : > { %2284 = vperm.xlu0 %2710, %v4226_v51   ;;  %v2063_v51 = vpop.permute.xlu1 %2062 }
 0x479   : > { %2184 = vmatpush.bf16.msra.mxu1 %v2027_v32  ;;  %2615 = vmatpush.bf16.msra.mxu3 %v2027_v32 }
 0x47a   : > { %2268 = vperm.xlu2 %2709, %v4232_v33   ;;  %2300 = vperm.xlu1 %2708, %v2048_v23  }
 0x47d   : > { %2185 = vmatpush.bf16.msra.mxu1 %v2026_v38  ;;  %2616 = vmatpush.bf16.msra.mxu3 %v2026_v38  ;;  %v4351_v33 = vpop.permute.xlu2 %2067 }
 0x480   : > { %2186 = vmatmul.bf16.vlgmr.msra.gmra.mxu1 %v2592_v21  ;;  %2206 = vmatmul.bf16.vlgmr.msra.gmra.mxu3 %v2596_v47  ;;  %v4353_v36 = vpop.permute.xlu1 %2072 }
 0x481   : > { %2296 = vperm.xlu0 %2710, %v4244_v5  }
 0x482   : > { %2280 = vperm.xlu2 %2709, %v4250_v49   ;;  %v2594_v49 = vld [vmem:[%s4473_s6 + $0x10] sm:$0xff] }
 0x488   : > { %v4357_v54 = vpop.permute.xlu1 %2087 }
 0x48a   : > { %2292 = vperm.xlu2 %2709, %v4273_v28  }
 0x490   : > { %2191 = vmatmul.bf16.gmra.mxu1 %v2593_v16  ;;  %2211 = vmatmul.bf16.gmra.mxu3 %v2597_v55 }
 0x492   : > { %2304 = vperm.xlu2 %2709, %v4292_v43  }
 0x49b   : > { %v4355_v5 = vpop.permute.xlu2 %2077 }
 0x4a0   : > { %2196 = vmatmul.bf16.gmra.mxu1 %v2594_v49  ;;  %2216 = vmatmul.bf16.gmra.mxu3 %v2598_v57 }
 0x4a3   : > { %v2093_v37 = vpop.permute.xlu2 %2092 }
 0x4ab   : > { %v4361_v60 = vpop.permute.xlu2 %2107 }
 0x4af   : > { %v2058_v10 = vpop.permute.xlu0 %2057 }
 0x4b0   : > { %2201 = vmatmul.bf16.gmra.mxu1 %v2595_v25  ;;  %2221 = vmatmul.bf16.gmra.mxu3 %v2599_v20 }
 0x4b3   : > { %v2103_v1 = vpop.permute.xlu1 %2102 }
 0x4b9   : > { %v4359_v28 = vpop.permute.xlu0 %2082 }
 0x4ba   : > { %v4365_v2 = vpop.permute.xlu2 %2122 }
 0x4bb   : > { %v4363_v30 = vpop.permute.xlu1 %2117 }
 0x4c1   : > { %v2098_v4 = vpop.permute.xlu0 %2097 }
 0x4c4   : > { %v2245_v62 = vpop.permute.xlu1 %2244  ;;  %v2249_v61 = vpop.permute.xlu2 %2248 }
 0x4c9   : > { %v4367_v11 = vpop.permute.xlu0 %2112 }
 0x4cc   : > { %v2257_v27 = vpop.permute.xlu1 %2256  ;;  %v4371_v14 = vpop.permute.xlu2 %2260 }
 0x4d1   : > { %v4369_v41 = vpop.permute.xlu0 %2127 }
 0x4d4   : > { %v4373_v46 = vpop.permute.xlu1 %2264  ;;  %v4378_v23 = vpop.permute.xlu2 %2268 }
 0x4da   : > { %v2253_v52 = vpop.permute.xlu0 %2252 }
 0x4dc   : > { %v2277_v29 = vpop.permute.xlu1 %2276  ;;  %v2281_v45 = vpop.permute.xlu2 %2280 }
 0x4e2   : > { %v4385_v9 = vpop.permute.xlu0 %2272 }
 0x4ea   : > { %v2285_v21 = vpop.permute.xlu0 %2284 }
 0x4fd   : > { %v2187_v26 = vpop.f32.mrf.mxu1 }
 0x4fe   : > { %v2188_v17 = vadd.f32 %v2187_v26, %v2053_v56 }
 0x500   : > { %vm2227_vm6 = vcmp.ge.f32.partialorder %v2188_v17, 0.0  ;;  %v2307_v43 = vmul.f32 %v2245_v62, %v2188_v17  ;;  %v4604_v62 = vld [vmem:[#allocation26_spill] sm:$0xff] }
 0x502   : > { %v2323_v6 = vsel %vm2227_vm6, %v2188_v17, %v2307_v43 }
 0x503   : > { %v2355_v42 = vadd.f32 %v2323_v6, %v4018_v3  ;;  %v2207_v13 = vpop.f32.mrf.mxu3 }
 0x504   : > { %v2208_v12 = vadd.f32 %v2207_v13, %v2093_v37  ;;  %v4606_v13 = vld [vmem:[#allocation22_spill] sm:$0xff] }
 0x505   : > { %2371 = vst [vmem:[%s4381_s26] sm:$0xff] %v2355_v42  ;;  %v2189_v22 = vpop.f32.mrf.mxu1 }
 0x506   : > { %vm2235_vm7 = vcmp.ge.f32.partialorder %v2208_v12, 0.0  ;;  %v2315_v8 = vmul.f32 %v2277_v29, %v2208_v12  ;;  %v2190_v63 = vadd.f32 %v2189_v22, %v2058_v10  ;;  %v2289_v10 = vpop.permute.xlu1 %2288  ;;  %v4607_v22 = vld [vmem:[#allocation37_spill] sm:$0xff] }
 0x508   : > { %v2331_v15 = vsel %vm2235_vm7, %v2208_v12, %v2315_v8  ;;  %vm2228_vm8 = vcmp.ge.f32.partialorder %v2190_v63, 0.0  ;;  %v2308_v53 = vmul.f32 %v2249_v61, %v2190_v63 }
 0x509   : > { %v2363_v18 = vadd.f32 %v2331_v15, %v3889_v35  ;;  %v2297_v15 = vpop.permute.xlu0 %2296 }
 0x50a   : > { %v2324_v3 = vsel %vm2228_vm8, %v2190_v63, %v2308_v53 }
 0x50b   : > { %2379 = vst [vmem:[%s4381_s26 + $0x40] sm:$0xff] %v2363_v18  ;;  %v2356_v7 = vadd.f32 %v2324_v3, %v4074_v59  ;;  %v2209_v24 = vpop.f32.mrf.mxu3 }
 0x50c   : > { %v2210_v50 = vadd.f32 %v2209_v24, %v2098_v4 }
 0x50d   : > { %2372 = vst [vmem:[%s4381_s26 + $0x8] sm:$0xff] %v2356_v7  ;;  %v2192_v39 = vpop.f32.mrf.mxu1  ;;  %v4608_v7 = vld [vmem:[#allocation31_spill] sm:$0xff] }
 0x50e   : > { %vm2236_vm9 = vcmp.ge.f32.partialorder %v2210_v50, 0.0  ;;  %v2316_v34 = vmul.f32 %v2281_v45, %v2210_v50  ;;  %v2193_v19 = vadd.f32 %v2192_v39, %v2063_v51  ;;  %v4609_v45 = vld [vmem:[#allocation32_spill] sm:$0xff] }
 0x510   : > { %v2332_v32 = vsel %vm2236_vm9, %v2210_v50, %v2316_v34  ;;  %vm2229_vm10 = vcmp.ge.f32.partialorder %v2193_v19, 0.0  ;;  %v2309_v40 = vmul.f32 %v2253_v52, %v2193_v19  ;;  %v2293_v52 = vpop.permute.xlu2 %2292 }
 0x511   : > { %v2364_v35 = vadd.f32 %v2332_v32, %v4047_v48 }
 0x512   : > { %v2325_v44 = vsel %vm2229_vm10, %v2193_v19, %v2309_v40  ;;  %v2301_v19 = vpop.permute.xlu1 %2300 }
 0x513   : > { %2380 = vst [vmem:[%s4381_s26 + $0x48] sm:$0xff] %v2364_v35  ;;  %v2357_v38 = vadd.f32 %v2325_v44, %v4050_v58  ;;  %v2212_v59 = vpop.f32.mrf.mxu3  ;;  %v2353_v35 = vld [vmem:[#allocation2 + $0xe0] sm:$0xff] }
 0x514   : > { %v2213_v47 = vadd.f32 %v2212_v59, %v2103_v1 }
 0x515   : > { %2373 = vst [vmem:[%s4381_s26 + $0x10] sm:$0xff] %v2357_v38  ;;  %v2194_v16 = vpop.f32.mrf.mxu1 }
 0x516   : > { %vm2237_vm11 = vcmp.ge.f32.partialorder %v2213_v47, 0.0  ;;  %v2195_v55 = vadd.f32 %v2194_v16, %v4351_v33  ;;  %v2317_v49 = vmul.f32 %v2285_v21, %v2213_v47  ;;  %v4610_v21 = vld [vmem:[#allocation7_spill] sm:$0xff] }
 0x518   : > { %vm2230_vm12 = vcmp.ge.f32.partialorder %v2195_v55, 0.0  ;;  %v2310_v57 = vmul.f32 %v2257_v27, %v2195_v55  ;;  %v2333_v25 = vsel %vm2237_vm11, %v2213_v47, %v2317_v49  ;;  %v2305_v16 = vpop.permute.xlu2 %2304  ;;  %v2354_v49 = vld [vmem:[#allocation2 + $0xf0] sm:$0xff] }
 0x519   : > { %v2365_v48 = vadd.f32 %v2333_v25, %v3985_v31 }
 0x51a   : > { %v2326_v20 = vsel %vm2230_vm12, %v2195_v55, %v2310_v57 }
 0x51b   : > { %v2358_v56 = vadd.f32 %v2326_v20, %v4087_v0  ;;  %2381 = vst [vmem:[%s4381_s26 + $0x50] sm:$0xff] %v2365_v48  ;;  %v2214_v58 = vpop.f32.mrf.mxu3  ;;  %v4605_v0 = vld [vmem:[#allocation19_spill] sm:$0xff] }
 0x51c   : > { %v2215_v51 = vadd.f32 %v2214_v58, %v4361_v60 }
 0x51d   : > { %2374 = vst [vmem:[%s4381_s26 + $0x18] sm:$0xff] %v2358_v56  ;;  %v2197_v37 = vpop.f32.mrf.mxu1 }
 0x51e   : > { %vm2238_vm13 = vcmp.ge.f32.partialorder %v2215_v51, 0.0  ;;  %v2318_v33 = vmul.f32 %v2289_v10, %v2215_v51  ;;  %v2198_v1 = vadd.f32 %v2197_v37, %v4353_v36 }
 0x520   : > { %v2334_v4 = vsel %vm2238_vm13, %v2215_v51, %v2318_v33  ;;  %vm2231_vm14 = vcmp.ge.f32.partialorder %v2198_v1, 0.0  ;;  %v2311_v31 = vmul.f32 %v4371_v14, %v2198_v1 }
 0x521   : > { %v2366_v61 = vadd.f32 %v2334_v4, %v4604_v62 }
 0x522   : > { %v2327_v27 = vsel %vm2231_vm14, %v2198_v1, %v2311_v31 }
 0x523   : > { %2382 = vst [vmem:[%s4381_s26 + $0x58] sm:$0xff] %v2366_v61  ;;  %v2359_v26 = vadd.f32 %v2327_v27, %v4605_v0  ;;  %v2217_v60 = vpop.f32.mrf.mxu3 }
 0x524   : > { %v2218_v17 = vadd.f32 %v2217_v60, %v4367_v11 }
 0x525   : > { %2375 = vst [vmem:[%s4381_s26 + $0x20] sm:$0xff] %v2359_v26  ;;  %v2199_v43 = vpop.f32.mrf.mxu1 }
 0x526   : > { %vm2239_vm15 = vcmp.ge.f32.partialorder %v2218_v17, 0.0  ;;  %v2319_v36 = vmul.f32 %v2293_v52, %v2218_v17  ;;  %v2200_v6 = vadd.f32 %v2199_v43, %v4355_v5 }
 0x528   : > { %v2335_v42 = vsel %vm2239_vm15, %v2218_v17, %v2319_v36  ;;  %vm2232_vm0 = vcmp.ge.f32.partialorder %v2200_v6, 0.0  ;;  %v2312_v14 = vmul.f32 %v4373_v46, %v2200_v6 }
 0x529   : > { %v2367_v29 = vadd.f32 %v2335_v42, %v4606_v13 }
 0x52a   : > { %v2328_v12 = vsel %vm2232_vm0, %v2200_v6, %v2312_v14 }
 0x52b   : > { %2383 = vst [vmem:[%s4381_s26 + $0x60] sm:$0xff] %v2367_v29  ;;  %v2360_v8 = vadd.f32 %v2328_v12, %v4607_v22  ;;  %v2219_v11 = vpop.f32.mrf.mxu3 }
 0x52c   : > { %v2220_v63 = vadd.f32 %v2219_v11, %v4363_v30 }
 0x52d   : > { %2376 = vst [vmem:[%s4381_s26 + $0x28] sm:$0xff] %v2360_v8  ;;  %v2202_v53 = vpop.f32.mrf.mxu1 }
 0x52e   : > { %vm2240_vm1 = vcmp.ge.f32.partialorder %v2220_v63, 0.0  ;;  %v2320_v5 = vmul.f32 %v2297_v15, %v2220_v63  ;;  %v2203_v18 = vadd.f32 %v2202_v53, %v4359_v28 }
 0x530   : > { %v2336_v3 = vsel %vm2240_vm1, %v2220_v63, %v2320_v5  ;;  %vm2233_vm2 = vcmp.ge.f32.partialorder %v2203_v18, 0.0  ;;  %v2313_v46 = vmul.f32 %v4378_v23, %v2203_v18 }
 0x531   : > { %v2368_v24 = vadd.f32 %v2336_v3, %v4608_v7 }
 0x532   : > { %v2329_v50 = vsel %vm2233_vm2, %v2203_v18, %v2313_v46 }
 0x533   : > { %2384 = vst [vmem:[%s4381_s26 + $0x68] sm:$0xff] %v2368_v24  ;;  %v2361_v39 = vadd.f32 %v2329_v50, %v4609_v45  ;;  %v2222_v30 = vpop.f32.mrf.mxu3 }
 0x534   : > { %v2223_v34 = vadd.f32 %v2222_v30, %v4365_v2 }
 0x535   : > { %2377 = vst [vmem:[%s4381_s26 + $0x30] sm:$0xff] %v2361_v39  ;;  %v2204_v32 = vpop.f32.mrf.mxu1 }
 0x536   : > { %vm2241_vm3 = vcmp.ge.f32.partialorder %v2223_v34, 0.0  ;;  %v2321_v28 = vmul.f32 %v2301_v19, %v2223_v34  ;;  %v2205_v23 = vadd.f32 %v2204_v32, %v4357_v54 }
 0x538   : > { %v2337_v40 = vsel %vm2241_vm3, %v2223_v34, %v2321_v28  ;;  %vm2234_vm4 = vcmp.ge.f32.partialorder %v2205_v23, 0.0  ;;  %v2314_v44 = vmul.f32 %v4385_v9, %v2205_v23 }
 0x539   : > { %v2369_v38 = vadd.f32 %v2353_v35, %v2337_v40 }
 0x53a   : > { %v2330_v59 = vsel %vm2234_vm4, %v2205_v23, %v2314_v44 }
 0x53b   : > { %2385 = vst [vmem:[%s4381_s26 + $0x70] sm:$0xff] %v2369_v38  ;;  %v2362_v2 = vadd.f32 %v2330_v59, %v4610_v21  ;;  %v2224_v47 = vpop.f32.mrf.mxu3 }
 0x53c   : > { %v2225_v54 = vadd.f32 %v2224_v47, %v4369_v41 }
 0x53d   : > { %2378 = vst [vmem:[%s4381_s26 + $0x38] sm:$0xff] %v2362_v2 }
 0x53e   : > { %vm2242_vm5 = vcmp.ge.f32.partialorder %v2225_v54, 0.0  ;;  %v2322_v9 = vmul.f32 %v2305_v16, %v2225_v54 }
 0x540   : > { %v2338_v55 = vsel %vm2242_vm5, %v2225_v54, %v2322_v9 }
 0x541   : > { %v2370_v57 = vadd.f32 %v2354_v49, %v2338_v55 }
 0x543   : > { %2386 = vst [vmem:[%s4381_s26 + $0x78] sm:$0xff] %v2370_v57 }
 0x544   : > { %2762 = shalt.err (!%p2759_p5)
}
 0x545   : > { %s2823_s22 = smov 128   ;;  %s2824_s26 = smov 8  }
 0x546   : > { %2617 = dma.vmem_to_hbm [thread:$0]  (%p2910_p4), %s2402_s16, 2048, %s2404_s30, %s2388_s21, %s2823_s22, %s2823_s22, %s2824_s26  }
 0x547 PF: > { %p2623_p6 = scmp.ge.s32.totalorder %s2813_s10, 2  ;;  %s2418_s14 = sand.u32 1, %s2793_s27  }
 0x548   : > { %s2419_s20 = scalar_lea.sflag [#allocation4], %s2418_s14 }
 0x549   : > { %p2620_p7 = pnand %p2623_p6, %p2917_p8 }
 0x54b   : > { %p2621_p9 = pneg %p2620_p7 }
 0x54d   : > { %2788 = dma.done.wait (%p2621_p9), %s2419_s20, 2048  }
 0x54e   : > { %2790 = vsyncadd (%p2621_p9), %s2419_s20, 4294965248  ;;  %s21_s10 = sadd.s32 1, %s2813_s10   ;;  %s4611_s27 = smov %s2797_s28 }
 0x54f   : > { %p18_p10 = scmp.ge.s32.totalorder %s21_s10, 4   ;;  %s4612_s28 = smov %s2801_s29 }
 0x550   : > { %s4613_s29 = smov %s2923_s18  ;;  %s4614_s30 = smov %s2809_s9 }
 0x551   : > { %s4615_s9 = smov %s4617_s13  ;;  %20 = sbr.rel (!%p18_p10) target bundleno = 4 (0x4), region = 90 }
 0x556   :  { %2425 = vsyncpa [#allocation4], 1 }
 0x557   :  { %2427 = vsyncpa [#allocation4 + $0x1], 1 }

</bundles_post_ra>
